<compile_context>
chip_gen: v5e
topology: v5e:2x2
jax: 0.10.0
libtpu: 0.0.40
codegen_flags: <defaults>
</compile_context>

<pallas_src>
import math
import functools

import jax
import jax.numpy as jnp
from jax.experimental import pallas as pl
from jax.experimental.pallas import tpu as pltpu

# ---------------- model dims (small synthetic config) ----------------
D_MSA = 32        # d_msa
D_MSA_FULL = 16   # d_msa_full
D_PAIR = 32       # d_pair
D_STATE = 16      # d_state (SE3_param_topk['l0_out_features'])
N_TOKENS = 21
D_T1D = 22
D_T2D = 44
D_MSA_INIT = 48   # raw msa_latent feature dim
D_FULL_INIT = 25  # raw msa_full feature dim (matches Extra_emb d_init=25)
N_RBF = 36
N_POSBINS = 33
N_ITER = 2        # simplified number of simulator frame outputs
D_TA = 3 + 20     # fused T (3) + alpha (10*2) head width

N_SYM = 37 + 37           # dist | omega
N_AP = 37 + 19 + 64       # theta | phi | pae (fused asym + pae heads)

MXU_DTYPE = jnp.bfloat16  # matmul operand dtype; accumulation stays f32


def _mm(a, b):
    """MXU matmul with bf16 operands and f32 accumulation."""
    return jnp.dot(a.astype(MXU_DTYPE), b.astype(MXU_DTYPE),
                   preferred_element_type=jnp.float32)


def _pick_tm(M, target=512):
    """Largest power-of-two row tile <= target that exactly divides M (so no
    pad / slice copies), preferring >=2 grid steps for megacore; else full M."""
    for cand in (1024, 512, 256, 128, 64, 32, 16, 8):
        if cand <= target and cand < M and M % cand == 0:
            return cand
    return M


_PARALLEL = pltpu.CompilerParams(dimension_semantics=("parallel",))
# TODO(synk): at real RoseTTAFold sizes set vmem_limit_bytes explicitly (v7x
# has 64 MiB VMEM) — at these toy dims the defaults are far from the limit.


# ======================= Pallas kernels =======================

def _linear_kernel(x_ref, w_ref, b_ref, o_ref, *, act):
    y = _mm(x_ref[...], w_ref[...]) + b_ref[...]
    if act == "relu":
        y = jnp.maximum(y, 0.0)
    o_ref[...] = y.astype(o_ref.dtype)


def pallas_linear(x, w, b, act=None, target_tm=512):
    """y = act(x @ w + b).  x: (..., K), w: (K, N) [bf16], b: (N,) [f32]."""
    K = x.shape[-1]
    N = w.shape[-1]
    lead = x.shape[:-1]
    M = int(math.prod(lead)) if lead else 1
    tm = _pick_tm(M, target_tm)
    out = pl.pallas_call(
        functools.partial(_linear_kernel, act=act),
        out_shape=jax.ShapeDtypeStruct((M, N), jnp.float32),
        grid=(M // tm,),
        in_specs=[
            pl.BlockSpec((tm, K), lambda i: (i, 0)),
            pl.BlockSpec((K, N), lambda i: (0, 0)),
            pl.BlockSpec((1, N), lambda i: (0, 0)),
        ],
        out_specs=pl.BlockSpec((tm, N), lambda i: (i, 0)),
        compiler_params=_PARALLEL,
    )(x.reshape(M, K), w, b.reshape(1, N))
    return out.reshape(lead + (N,))


def _pair_path_kernel(base_ref, d_ref, t2d_ref, centers_ref,
                      rbf_w_ref, t2d_w_ref, bias_ref,
                      sim_w_ref, sim_b_ref, o_ref):
    # Fused: recycling RBF featurisation (EUP exp) + projection, template
    # t2d projection, pair assembly, then N_ITER simulator residual blocks
    # with the pair tile kept resident in VMEM/vregs.
    d = d_ref[...]                                        # (tm, 1)
    rbf = jnp.exp(-0.5 * (d - centers_ref[...]) ** 2)     # (tm, N_RBF)
    pair = (base_ref[...]
            + _mm(rbf, rbf_w_ref[...])
            + _mm(t2d_ref[...], t2d_w_ref[...])
            + bias_ref[...])
    for _ in range(N_ITER):
        pair = pair + jnp.maximum(_mm(pair, sim_w_ref[...]) + sim_b_ref[...], 0.0)
    o_ref[...] = pair.astype(o_ref.dtype)


def pair_path(pair_base, d, t2d_mean, params):
    B, L = pair_base.shape[0], pair_base.shape[1]
    M = B * L * L
    tm = _pick_tm(M)
    centers = jnp.linspace(2.0, 22.0, N_RBF).astype(jnp.float32).reshape(1, N_RBF)
    bias = (params["rbf_b"] + params["t2d_b"]).reshape(1, D_PAIR)
    out = pl.pallas_call(
        _pair_path_kernel,
        out_shape=jax.ShapeDtypeStruct((M, D_PAIR), jnp.float32),
        grid=(M // tm,),
        in_specs=[
            pl.BlockSpec((tm, D_PAIR), lambda i: (i, 0)),
            pl.BlockSpec((tm, 1), lambda i: (i, 0)),
            pl.BlockSpec((tm, D_T2D), lambda i: (i, 0)),
            pl.BlockSpec((1, N_RBF), lambda i: (0, 0)),
            pl.BlockSpec((N_RBF, D_PAIR), lambda i: (0, 0)),
            pl.BlockSpec((D_T2D, D_PAIR), lambda i: (0, 0)),
            pl.BlockSpec((1, D_PAIR), lambda i: (0, 0)),
            pl.BlockSpec((D_PAIR, D_PAIR), lambda i: (0, 0)),
            pl.BlockSpec((1, D_PAIR), lambda i: (0, 0)),
        ],
        out_specs=pl.BlockSpec((tm, D_PAIR), lambda i: (i, 0)),
        compiler_params=_PARALLEL,
    )(pair_base.reshape(M, D_PAIR), d.reshape(M, 1), t2d_mean.reshape(M, D_T2D),
      centers, params["rbf_w"], params["t2d_w"], bias,
      params["sim_pair_w"], params["sim_pair_b"].reshape(1, D_PAIR))
    return out.reshape(B, L, L, D_PAIR)


def _msa_path_kernel(msa_ref, sim_w_ref, sim_b_ref, aa_w_ref, aa_b_ref,
                     msa_out_ref, aa_out_ref):
    msa = msa_ref[...]
    for _ in range(N_ITER):
        msa = msa + jnp.maximum(_mm(msa, sim_w_ref[...]) + sim_b_ref[...], 0.0)
    msa_out_ref[...] = msa.astype(msa_out_ref.dtype)
    # MaskedTokenNetwork head fused (msa never leaves VMEM between them).
    aa_out_ref[...] = (_mm(msa, aa_w_ref[...]) + aa_b_ref[...]).astype(aa_out_ref.dtype)


def msa_path(msa, params):
    B, N, L, _ = msa.shape
    M = B * N * L
    tm = _pick_tm(M)
    msa_out, aa_out = pl.pallas_call(
        _msa_path_kernel,
        out_shape=(jax.ShapeDtypeStruct((M, D_MSA), jnp.float32),
                   jax.ShapeDtypeStruct((M, N_TOKENS), jnp.float32)),
        grid=(M // tm,),
        in_specs=[
            pl.BlockSpec((tm, D_MSA), lambda i: (i, 0)),
            pl.BlockSpec((D_MSA, D_MSA), lambda i: (0, 0)),
            pl.BlockSpec((1, D_MSA), lambda i: (0, 0)),
            pl.BlockSpec((D_MSA, N_TOKENS), lambda i: (0, 0)),
            pl.BlockSpec((1, N_TOKENS), lambda i: (0, 0)),
        ],
        out_specs=(pl.BlockSpec((tm, D_MSA), lambda i: (i, 0)),
                   pl.BlockSpec((tm, N_TOKENS), lambda i: (i, 0))),
        compiler_params=_PARALLEL,
    )(msa.reshape(M, D_MSA),
      params["sim_msa_w"], params["sim_msa_b"].reshape(1, D_MSA),
      params["aa_w"], params["aa_b"].reshape(1, N_TOKENS))
    return msa_out.reshape(B, N, L, D_MSA), aa_out.reshape(B, N, L, N_TOKENS)


def _state_path_kernel(base_ref, t1d_ref, t1d_w_ref, t1d_b_ref,
                       sim_w_ref, sim_b_ref, ta_w_ref, ta_b_ref,
                       state_out_ref, ta_out_ref):
    # Fused: template t1d projection + N_ITER residual blocks + per-iteration
    # fused T/alpha head (23 output lanes instead of two 3/20-wide launches).
    state = base_ref[...] + _mm(t1d_ref[...], t1d_w_ref[...]) + t1d_b_ref[...]
    for it in range(N_ITER):
        state = state + jnp.maximum(_mm(state, sim_w_ref[...]) + sim_b_ref[...], 0.0)
        ta_out_ref[it] = (_mm(state, ta_w_ref[...]) + ta_b_ref[...]).astype(ta_out_ref.dtype)
    state_out_ref[...] = state.astype(state_out_ref.dtype)


def state_path(state_base, t1d_mean, params):
    B, L, _ = state_base.shape
    M = B * L
    tm = _pick_tm(M)
    state_out, ta_out = pl.pallas_call(
        _state_path_kernel,
        out_shape=(jax.ShapeDtypeStruct((M, D_STATE), jnp.float32),
                   jax.ShapeDtypeStruct((N_ITER, M, D_TA), jnp.float32)),
        grid=(M // tm,),
        in_specs=[
            pl.BlockSpec((tm, D_STATE), lambda i: (i, 0)),
            pl.BlockSpec((tm, D_T1D), lambda i: (i, 0)),
            pl.BlockSpec((D_T1D, D_STATE), lambda i: (0, 0)),
            pl.BlockSpec((1, D_STATE), lambda i: (0, 0)),
            pl.BlockSpec((D_STATE, D_STATE), lambda i: (0, 0)),
            pl.BlockSpec((1, D_STATE), lambda i: (0, 0)),
            pl.BlockSpec((D_STATE, D_TA), lambda i: (0, 0)),
            pl.BlockSpec((1, D_TA), lambda i: (0, 0)),
        ],
        out_specs=(pl.BlockSpec((tm, D_STATE), lambda i: (i, 0)),
                   pl.BlockSpec((N_ITER, tm, D_TA), lambda i: (0, i, 0))),
        compiler_params=_PARALLEL,
    )(state_base.reshape(M, D_STATE), t1d_mean.reshape(M, D_T1D),
      params["t1d_w"], params["t1d_b"].reshape(1, D_STATE),
      params["sim_state_w"], params["sim_state_b"].reshape(1, D_STATE),
      params["ta_w"], params["ta_b"].reshape(1, D_TA))
    return state_out.reshape(B, L, D_STATE), ta_out.reshape(N_ITER, B, L, D_TA)


def _pair_heads_kernel(pair_ref, sym_ref, w_sym_ref, b_sym_ref,
                       w_ap_ref, b_ap_ref, sym_out_ref, ap_out_ref):
    # DistanceNetwork (dist/omega from symmetrised pair; theta/phi asymmetric)
    # + PAENetwork fused: pair is read once, two wide outputs.
    sym_out_ref[...] = (_mm(sym_ref[...], w_sym_ref[...])
                        + b_sym_ref[...]).astype(sym_out_ref.dtype)
    ap_out_ref[...] = (_mm(pair_ref[...], w_ap_ref[...])
                       + b_ap_ref[...]).astype(ap_out_ref.dtype)


def pair_heads(pair, params):
    B, L = pair.shape[0], pair.shape[1]
    M = B * L * L
    tm = _pick_tm(M)
    pair_sym = 0.5 * (pair + pair.transpose(0, 2, 1, 3))
    sym_out, ap_out = pl.pallas_call(
        _pair_heads_kernel,
        out_shape=(jax.ShapeDtypeStruct((M, N_SYM), jnp.float32),
                   jax.ShapeDtypeStruct((M, N_AP), jnp.float32)),
        grid=(M // tm,),
        in_specs=[
            pl.BlockSpec((tm, D_PAIR), lambda i: (i, 0)),
            pl.BlockSpec((tm, D_PAIR), lambda i: (i, 0)),
            pl.BlockSpec((D_PAIR, N_SYM), lambda i: (0, 0)),
            pl.BlockSpec((1, N_SYM), lambda i: (0, 0)),
            pl.BlockSpec((D_PAIR, N_AP), lambda i: (0, 0)),
            pl.BlockSpec((1, N_AP), lambda i: (0, 0)),
        ],
        out_specs=(pl.BlockSpec((tm, N_SYM), lambda i: (i, 0)),
                   pl.BlockSpec((tm, N_AP), lambda i: (i, 0))),
        compiler_params=_PARALLEL,
    )(pair.reshape(M, D_PAIR), pair_sym.reshape(M, D_PAIR),
      params["c6d_sym_w"], params["c6d_sym_b"].reshape(1, N_SYM),
      params["ap_w"], params["ap_b"].reshape(1, N_AP))
    return sym_out.reshape(B, L, L, N_SYM), ap_out.reshape(B, L, L, N_AP)


def _state_heads_kernel(state_ref, msa0_ref, ln_g_ref, ln_b_ref,
                        lddt_w_ref, lddt_b_ref,
                        exp_wm_ref, exp_ws_ref, exp_b_ref,
                        lddt_out_ref, exp_out_ref):
    # LDDTNetwork (LayerNorm epilogue fused) + ExpResolvedNetwork (split
    # weights: no concat materialisation) in one kernel.
    s = state_ref[...].astype(jnp.float32)
    mu = jnp.mean(s, axis=-1, keepdims=True)
    var = jnp.mean((s - mu) ** 2, axis=-1, keepdims=True)
    sn = (s - mu) * jax.lax.rsqrt(var + 1e-5) * ln_g_ref[...] + ln_b_ref[...]
    lddt_out_ref[...] = (_mm(sn, lddt_w_ref[...]) + lddt_b_ref[...]).astype(lddt_out_ref.dtype)
    exp_out_ref[...] = (_mm(msa0_ref[...], exp_wm_ref[...])
                        + _mm(s, exp_ws_ref[...])
                        + exp_b_ref[...]).astype(exp_out_ref.dtype)


def state_heads(state, msa0, params):
    B, L, _ = state.shape
    M = B * L
    tm = _pick_tm(M)
    lddt_out, exp_out = pl.pallas_call(
        _state_heads_kernel,
        out_shape=(jax.ShapeDtypeStruct((M, 50), jnp.float32),
                   jax.ShapeDtypeStruct((M, 1), jnp.float32)),
        grid=(M // tm,),
        in_specs=[
            pl.BlockSpec((tm, D_STATE), lambda i: (i, 0)),
            pl.BlockSpec((tm, D_MSA), lambda i: (i, 0)),
            pl.BlockSpec((1, D_STATE), lambda i: (0, 0)),
            pl.BlockSpec((1, D_STATE), lambda i: (0, 0)),
            pl.BlockSpec((D_STATE, 50), lambda i: (0, 0)),
            pl.BlockSpec((1, 50), lambda i: (0, 0)),
            pl.BlockSpec((D_MSA, 1), lambda i: (0, 0)),
            pl.BlockSpec((D_STATE, 1), lambda i: (0, 0)),
            pl.BlockSpec((1, 1), lambda i: (0, 0)),
        ],
        out_specs=(pl.BlockSpec((tm, 50), lambda i: (i, 0)),
                   pl.BlockSpec((tm, 1), lambda i: (i, 0))),
        compiler_params=_PARALLEL,
    )(state.reshape(M, D_STATE), msa0.reshape(M, D_MSA),
      params["lddt_ln_g"].reshape(1, D_STATE), params["lddt_ln_b"].reshape(1, D_STATE),
      params["lddt_w"], params["lddt_b"].reshape(1, 50),
      params["exp_wm"], params["exp_ws"], params["exp_b"].reshape(1, 1))
    return lddt_out.reshape(B, L, 50), exp_out.reshape(B, L)


# ======================= parameters =======================

def init_params(key):
    keys = iter(jax.random.split(key, 64))

    def w(shape, scale=0.05, dtype=MXU_DTYPE):
        return (scale * jax.random.normal(next(keys), shape, jnp.float32)).astype(dtype)

    p = {}
    # fused sequence-embedding table: [query(32) | left(32) | right(32) | state(16) | qfull(16)]
    d_seq = D_MSA + 2 * D_PAIR + D_STATE + D_MSA_FULL
    p["seq_table"] = w((N_TOKENS, d_seq), dtype=jnp.float32)
    p["seq_bias"] = jnp.zeros((d_seq,), jnp.float32)
    # relative-position embedding table (replaces one-hot @ W)
    p["pos_table"] = w((N_POSBINS, D_PAIR), dtype=jnp.float32)
    p["pos_bias"] = jnp.zeros((D_PAIR,), jnp.float32)
    # MSA_emb / Extra_emb projections
    p["msa_emb_w"] = w((D_MSA_INIT, D_MSA)); p["msa_emb_b"] = jnp.zeros((D_MSA,), jnp.float32)
    p["full_w"] = w((D_FULL_INIT, D_MSA_FULL)); p["full_b"] = jnp.zeros((D_MSA_FULL,), jnp.float32)
    # Recycling (LayerNorm of zero recycled state reduces to its bias)
    p["rec_msa_b"] = jnp.zeros((D_MSA,), jnp.float32)
    p["rec_pair_b"] = jnp.zeros((D_PAIR,), jnp.float32)
    p["rec_state_b"] = jnp.zeros((D_STATE,), jnp.float32)
    p["rbf_w"] = w((N_RBF, D_PAIR)); p["rbf_b"] = jnp.zeros((D_PAIR,), jnp.float32)
    # Templ_emb (templates mean-pooled before projection)
    p["t2d_w"] = w((D_T2D, D_PAIR)); p["t2d_b"] = jnp.zeros((D_PAIR,), jnp.float32)
    p["t1d_w"] = w((D_T1D, D_STATE)); p["t1d_b"] = jnp.zeros((D_STATE,), jnp.float32)
    # IterativeSimulator (simplified residual blocks)
    p["sim_msa_w"] = w((D_MSA, D_MSA)); p["sim_msa_b"] = jnp.zeros((D_MSA,), jnp.float32)
    p["sim_pair_w"] = w((D_PAIR, D_PAIR)); p["sim_pair_b"] = jnp.zeros((D_PAIR,), jnp.float32)
    p["sim_state_w"] = w((D_STATE, D_STATE)); p["sim_state_b"] = jnp.zeros((D_STATE,), jnp.float32)
    p["ta_w"] = w((D_STATE, D_TA)); p["ta_b"] = jnp.zeros((D_TA,), jnp.float32)
    # heads
    p["aa_w"] = w((D_MSA, N_TOKENS)); p["aa_b"] = jnp.zeros((N_TOKENS,), jnp.float32)
    p["c6d_sym_w"] = w((D_PAIR, N_SYM)); p["c6d_sym_b"] = jnp.zeros((N_SYM,), jnp.float32)
    p["ap_w"] = w((D_PAIR, N_AP)); p["ap_b"] = jnp.zeros((N_AP,), jnp.float32)
    p["lddt_ln_g"] = jnp.ones((D_STATE,), jnp.float32)
    p["lddt_ln_b"] = jnp.zeros((D_STATE,), jnp.float32)
    p["lddt_w"] = w((D_STATE, 50)); p["lddt_b"] = jnp.zeros((50,), jnp.float32)
    p["exp_wm"] = w((D_MSA, 1)); p["exp_ws"] = w((D_STATE, 1))
    p["exp_b"] = jnp.zeros((1,), jnp.float32)
    return p


# ======================= forward pass =======================

def rosettafold_forward(params, msa_latent, msa_full, seq, xyz, idx,
                        t1d, t2d, xyz_t, alpha_t, mask_t,
                        chain_idx, same_chain):
    B, N, L, _ = msa_latent.shape

    # ---- sequence embeddings: one-hot @ W == gather on W rows (exact) ----
    seq_emb = jnp.take(params["seq_table"], seq, axis=0) + params["seq_bias"]   # (B,L,128)
    o0, o1, o2, o3 = D_MSA, D_MSA + D_PAIR, D_MSA + 2 * D_PAIR, D_MSA + 2 * D_PAIR + D_STATE
    q = seq_emb[..., :o0]
    left = seq_emb[..., o0:o1]
    right = seq_emb[..., o1:o2]
    state0 = seq_emb[..., o2:o3]
    qf = seq_emb[..., o3:]

    # ---- latent_emb (MSA_emb) ----
    msa = pallas_linear(msa_latent, params["msa_emb_w"], params["msa_emb_b"])
    msa = msa + q[:, None]
    # recycling of zero msa_prev: LayerNorm(0) * g + b == b
    msa = msa.at[:, 0].add(params["rec_msa_b"])

    # ---- full_emb (Extra_emb) ----
    # TODO(synk): the simplified simulator below does not consume msa_full.
    msa_full_e = pallas_linear(msa_full, params["full_w"], params["full_b"])
    msa_full_e = msa_full_e + qf[:, None]

    # ---- pair base: left_i + right_j + rel-pos embedding + recycle bias ----
    relpos = jnp.clip(idx[:, None, :] - idx[:, :, None], -16, 16) + 16
    pos_emb = jnp.take(params["pos_table"], relpos, axis=0) + params["pos_bias"]
    pair_base = (left[:, :, None, :] + right[:, None, :, :] + pos_emb
                 + params["rec_pair_b"])

    # CA-CA distances for the recycling RBF (Gaussian featurisation is fused
    # inside the pair-path kernel, so the (B,L,L,36) tensor is never in HBM).
    ca = xyz[:, :, 1]
    d = jnp.sqrt(jnp.sum((ca[:, :, None, :] - ca[:, None, :, :]) ** 2, -1) + 1e-8)

    # ---- templ_emb: mean over templates BEFORE projection (exact) ----
    # TODO(synk): full Templ_emb template cross-attention not implemented;
    # mask_t / xyz_t / alpha_t unused in this simplified projection.
    t2d_mean = jnp.mean(t2d, axis=1)   # (B,L,L,D_T2D)
    t1d_mean = jnp.mean(t1d, axis=1)   # (B,L,D_T1D)

    # ---- simulator paths (fused kernels) ----
    # TODO(synk): IterativeSimulator (MSA/pair attention + SE(3) transformer)
    # approximated by residual linear blocks with identity rigid frames.
    pair = pair_path(pair_base, d, t2d_mean, params)
    msa_final, logits_aa4 = msa_path(msa, params)
    state_base = state0 + params["rec_state_b"]
    state, ta = state_path(state_base, t1d_mean, params)

    T = ta[..., :3]                                         # (n_iter,B,L,3)
    alpha = ta[..., 3:].reshape(N_ITER, B, L, 10, 2)
    R = jnp.broadcast_to(jnp.eye(3, dtype=jnp.float32), (N_ITER, B, L, 3, 3))

    # ---- prediction heads ----
    # MaskedTokenNetwork (fused into msa path)
    logits_aa = logits_aa4.transpose(0, 3, 1, 2).reshape(B, N_TOKENS, N * L)

    # DistanceNetwork + PAENetwork (fused pair heads, single pass over pair)
    sym, ap = pair_heads(pair, params)
    sym_t = sym.transpose(0, 3, 1, 2)     # (B, 74, L, L)
    ap_t = ap.transpose(0, 3, 1, 2)       # (B, 120, L, L)
    logits = (sym_t[:, :37],              # dist
              sym_t[:, 37:],              # omega
              ap_t[:, :37],               # theta
              ap_t[:, 37:56])             # phi
    logits_pae = ap_t[:, 56:]             # (B, 64, L, L)

    # BinderNetwork
    # TODO(synk): BinderNetwork internals approximated: expectation over low
    # PAE bins averaged over inter-chain pairs.
    probs = jax.nn.softmax(logits_pae, axis=1)
    p_close = jnp.sum(probs[:, :16], axis=1)
    inter = (same_chain == 0).astype(jnp.float32)
    p_bind = (jnp.sum(p_close * inter, axis=(1, 2))
              / jnp.maximum(jnp.sum(inter, axis=(1, 2)), 1.0))

    # LDDTNetwork + ExpResolvedNetwork (fused state heads)
    lddt, logits_exp = state_heads(state, msa_final[:, 0], params)
    lddt = lddt.transpose(0, 2, 1)

    # final coordinate update: xyz' = einsum('rblij,blaj->rblai', R, xyz - CA) + T
    xyz_c = xyz - xyz[:, :, 1][:, :, None, :]
    xyz_out = jnp.einsum("rblij,blaj->rblai", R, xyz_c) + T[:, :, :, None, :]

    symmsub = None
    return (logits, logits_aa, logits_exp, logits_pae, p_bind, xyz_out,
            alpha, symmsub, lddt, msa_final[:, 0], pair, state)


# ======================= driver =======================

if __name__ == "__main__":
    key = jax.random.PRNGKey(0)
    B, N, Nf, L, T_TMPL, NATOMS = 1, 4, 6, 16, 2, 27
    keys = jax.random.split(key, 10)

    msa_latent = jax.random.normal(keys[0], (B, N, L, D_MSA_INIT), jnp.float32)
    msa_full = jax.random.normal(keys[1], (B, Nf, L, D_FULL_INIT), jnp.float32)
    seq = jax.random.randint(keys[2], (B, L), 0, N_TOKENS)
    xyz = 3.0 * jax.random.normal(keys[3], (B, L, NATOMS, 3), jnp.float32)
    idx = jnp.broadcast_to(jnp.arange(L, dtype=jnp.int32), (B, L))
    t1d = jax.random.normal(keys[4], (B, T_TMPL, L, D_T1D), jnp.float32)
    t2d = jax.random.normal(keys[5], (B, T_TMPL, L, L, D_T2D), jnp.float32)
    xyz_t = 3.0 * jax.random.normal(keys[6], (B, T_TMPL, L, 3), jnp.float32)
    alpha_t = jax.random.normal(keys[7], (B, T_TMPL, L, 30), jnp.float32)
    mask_t = jnp.ones((B, T_TMPL, L, L), jnp.float32)
    chain_idx = jnp.concatenate(
        [jnp.zeros((B, L // 2), jnp.int32), jnp.ones((B, L - L // 2), jnp.int32)], axis=1)
    same_chain = (chain_idx[:, :, None] == chain_idx[:, None, :]).astype(jnp.int32)

    params = init_params(jax.random.PRNGKey(1))
    fwd = jax.jit(functools.partial(rosettafold_forward, params))
    outs = fwd(msa_latent, msa_full, seq, xyz, idx, t1d, t2d, xyz_t, alpha_t,
               mask_t, chain_idx, same_chain)
    for leaf in jax.tree_util.tree_leaves(outs):
        jax.block_until_ready(leaf)
    print("KERNEL_OK")
</pallas_src>

<mosaic_0001>
module attributes {stable_mosaic.version = 11 : i64} {
  func.func @_pair_path_kernel(%arg0: i32, %arg1: memref<128x32xf32, #tpu.memory_space<vmem>>, %arg2: memref<128x1xf32, #tpu.memory_space<vmem>>, %arg3: memref<128x44xf32, #tpu.memory_space<vmem>>, %arg4: memref<1x36xf32, #tpu.memory_space<vmem>>, %arg5: memref<36x32xbf16, #tpu.memory_space<vmem>>, %arg6: memref<44x32xbf16, #tpu.memory_space<vmem>>, %arg7: memref<1x32xf32, #tpu.memory_space<vmem>>, %arg8: memref<32x32xbf16, #tpu.memory_space<vmem>>, %arg9: memref<1x32xf32, #tpu.memory_space<vmem>>, %arg10: memref<128x32xf32, #tpu.memory_space<vmem>>) attributes {dimension_semantics = [#tpu.dimension_semantics<parallel>], iteration_bounds = array<i64: 2>, scalar_prefetch = 0 : i64, scratch_operands = 0 : i64, tpu.core_type = #tpu.core_type<tc>, window_params = [{transform_indices = @transform_0, window_bounds = array<i64: 128, 32>}, {transform_indices = @transform_1, window_bounds = array<i64: 128, 1>}, {transform_indices = @transform_2, window_bounds = array<i64: 128, 44>}, {pipeline_mode = #tpu.pipeline_mode<synchronous>, transform_indices = @transform_3, window_bounds = array<i64: 1, 36>}, {pipeline_mode = #tpu.pipeline_mode<synchronous>, transform_indices = @transform_4, window_bounds = array<i64: 36, 32>}, {pipeline_mode = #tpu.pipeline_mode<synchronous>, transform_indices = @transform_5, window_bounds = array<i64: 44, 32>}, {pipeline_mode = #tpu.pipeline_mode<synchronous>, transform_indices = @transform_6, window_bounds = array<i64: 1, 32>}, {pipeline_mode = #tpu.pipeline_mode<synchronous>, transform_indices = @transform_7, window_bounds = array<i64: 32, 32>}, {pipeline_mode = #tpu.pipeline_mode<synchronous>, transform_indices = @transform_8, window_bounds = array<i64: 1, 32>}, {transform_indices = @transform_9, window_bounds = array<i64: 128, 32>}]} {
    %c0 = arith.constant 0 : index
    %c0_0 = arith.constant 0 : index
    %0 = vector.load %arg2[%c0, %c0_0] : memref<128x1xf32, #tpu.memory_space<vmem>>, vector<128x1xf32>
    %c0_1 = arith.constant 0 : index
    %c0_2 = arith.constant 0 : index
    %1 = vector.load %arg4[%c0_1, %c0_2] : memref<1x36xf32, #tpu.memory_space<vmem>>, vector<1x36xf32>
    %2 = vector.broadcast %0 : vector<128x1xf32> to vector<128x36xf32>
    %3 = vector.broadcast %1 : vector<1x36xf32> to vector<128x36xf32>
    %4 = arith.subf %2, %3 : vector<128x36xf32>
    %5 = arith.mulf %4, %4 : vector<128x36xf32>
    %cst = arith.constant -5.000000e-01 : f32
    %6 = vector.broadcast %cst : f32 to vector<128x36xf32>
    %7 = arith.mulf %6, %5 : vector<128x36xf32>
    %8 = math.exp %7 : vector<128x36xf32>
    %c0_3 = arith.constant 0 : index
    %c0_4 = arith.constant 0 : index
    %9 = vector.load %arg1[%c0_3, %c0_4] : memref<128x32xf32, #tpu.memory_space<vmem>>, vector<128x32xf32>
    %c0_5 = arith.constant 0 : index
    %c0_6 = arith.constant 0 : index
    %10 = vector.load %arg5[%c0_5, %c0_6] : memref<36x32xbf16, #tpu.memory_space<vmem>>, vector<36x32xbf16>
    %11 = arith.truncf %8 : vector<128x36xf32> to vector<128x36xbf16>
    %cst_7 = arith.constant dense<0.000000e+00> : vector<128x32xf32>
    %12 = tpu.matmul %11, %10, %cst_7 {dimension_numbers = #tpu.dot_dimension_numbers<[1], [0], [0], [1], [0, 0, 1, 1], [], []>} : vector<128x36xbf16>, vector<36x32xbf16>, vector<128x32xf32> -> vector<128x32xf32>
    %13 = arith.addf %9, %12 : vector<128x32xf32>
    %c0_8 = arith.constant 0 : index
    %c0_9 = arith.constant 0 : index
    %14 = vector.load %arg3[%c0_8, %c0_9] : memref<128x44xf32, #tpu.memory_space<vmem>>, vector<128x44xf32>
    %c0_10 = arith.constant 0 : index
    %c0_11 = arith.constant 0 : index
    %15 = vector.load %arg6[%c0_10, %c0_11] : memref<44x32xbf16, #tpu.memory_space<vmem>>, vector<44x32xbf16>
    %16 = arith.truncf %14 : vector<128x44xf32> to vector<128x44xbf16>
    %cst_12 = arith.constant dense<0.000000e+00> : vector<128x32xf32>
    %17 = tpu.matmul %16, %15, %cst_12 {dimension_numbers = #tpu.dot_dimension_numbers<[1], [0], [0], [1], [0, 0, 1, 1], [], []>} : vector<128x44xbf16>, vector<44x32xbf16>, vector<128x32xf32> -> vector<128x32xf32>
    %18 = arith.addf %13, %17 : vector<128x32xf32>
    %c0_13 = arith.constant 0 : index
    %c0_14 = arith.constant 0 : index
    %19 = vector.load %arg7[%c0_13, %c0_14] : memref<1x32xf32, #tpu.memory_space<vmem>>, vector<1x32xf32>
    %20 = vector.broadcast %19 : vector<1x32xf32> to vector<128x32xf32>
    %21 = arith.addf %18, %20 : vector<128x32xf32>
    %c0_15 = arith.constant 0 : index
    %c0_16 = arith.constant 0 : index
    %22 = vector.load %arg8[%c0_15, %c0_16] : memref<32x32xbf16, #tpu.memory_space<vmem>>, vector<32x32xbf16>
    %23 = arith.truncf %21 : vector<128x32xf32> to vector<128x32xbf16>
    %cst_17 = arith.constant dense<0.000000e+00> : vector<128x32xf32>
    %24 = tpu.matmul %23, %22, %cst_17 {dimension_numbers = #tpu.dot_dimension_numbers<[1], [0], [0], [1], [0, 0, 1, 1], [], []>} : vector<128x32xbf16>, vector<32x32xbf16>, vector<128x32xf32> -> vector<128x32xf32>
    %c0_18 = arith.constant 0 : index
    %c0_19 = arith.constant 0 : index
    %25 = vector.load %arg9[%c0_18, %c0_19] : memref<1x32xf32, #tpu.memory_space<vmem>>, vector<1x32xf32>
    %26 = vector.broadcast %25 : vector<1x32xf32> to vector<128x32xf32>
    %27 = arith.addf %24, %26 : vector<128x32xf32>
    %cst_20 = arith.constant 0.000000e+00 : f32
    %28 = vector.broadcast %cst_20 : f32 to vector<128x32xf32>
    %29 = arith.maximumf %27, %28 : vector<128x32xf32>
    %30 = arith.addf %21, %29 : vector<128x32xf32>
    %c0_21 = arith.constant 0 : index
    %c0_22 = arith.constant 0 : index
    %31 = vector.load %arg8[%c0_21, %c0_22] : memref<32x32xbf16, #tpu.memory_space<vmem>>, vector<32x32xbf16>
    %32 = arith.truncf %30 : vector<128x32xf32> to vector<128x32xbf16>
    %cst_23 = arith.constant dense<0.000000e+00> : vector<128x32xf32>
    %33 = tpu.matmul %32, %31, %cst_23 {dimension_numbers = #tpu.dot_dimension_numbers<[1], [0], [0], [1], [0, 0, 1, 1], [], []>} : vector<128x32xbf16>, vector<32x32xbf16>, vector<128x32xf32> -> vector<128x32xf32>
    %c0_24 = arith.constant 0 : index
    %c0_25 = arith.constant 0 : index
    %34 = vector.load %arg9[%c0_24, %c0_25] : memref<1x32xf32, #tpu.memory_space<vmem>>, vector<1x32xf32>
    %35 = vector.broadcast %34 : vector<1x32xf32> to vector<128x32xf32>
    %36 = arith.addf %33, %35 : vector<128x32xf32>
    %cst_26 = arith.constant 0.000000e+00 : f32
    %37 = vector.broadcast %cst_26 : f32 to vector<128x32xf32>
    %38 = arith.maximumf %36, %37 : vector<128x32xf32>
    %39 = arith.addf %30, %38 : vector<128x32xf32>
    %c0_27 = arith.constant 0 : index
    %c0_28 = arith.constant 0 : index
    %40 = vector.load %arg10[%c0_27, %c0_28] : memref<128x32xf32, #tpu.memory_space<vmem>>, vector<128x32xf32>
    tpu.vector_store %arg10[%c0_27, %c0_28], %39 {strides = array<i32>} : memref<128x32xf32, #tpu.memory_space<vmem>>, vector<128x32xf32>,
    return
  }
  func.func @transform_0(%arg0: i32) -> (i32, i32) {
    %c0_i32 = arith.constant 0 : i32
    %c0_i32_0 = arith.constant 0 : i32
    return %arg0, %c0_i32 : i32, i32
  }
  func.func @transform_1(%arg0: i32) -> (i32, i32) {
    %c0_i32 = arith.constant 0 : i32
    %c0_i32_0 = arith.constant 0 : i32
    return %arg0, %c0_i32 : i32, i32
  }
  func.func @transform_2(%arg0: i32) -> (i32, i32) {
    %c0_i32 = arith.constant 0 : i32
    %c0_i32_0 = arith.constant 0 : i32
    return %arg0, %c0_i32 : i32, i32
  }
  func.func @transform_3(%arg0: i32) -> (i32, i32) {
    %c0_i32 = arith.constant 0 : i32
    %c0_i32_0 = arith.constant 0 : i32
    %c0_i32_1 = arith.constant 0 : i32
    return %c0_i32, %c0_i32_0 : i32, i32
  }
  func.func @transform_4(%arg0: i32) -> (i32, i32) {
    %c0_i32 = arith.constant 0 : i32
    %c0_i32_0 = arith.constant 0 : i32
    %c0_i32_1 = arith.constant 0 : i32
    return %c0_i32, %c0_i32_0 : i32, i32
  }
  func.func @transform_5(%arg0: i32) -> (i32, i32) {
    %c0_i32 = arith.constant 0 : i32
    %c0_i32_0 = arith.constant 0 : i32
    %c0_i32_1 = arith.constant 0 : i32
    return %c0_i32, %c0_i32_0 : i32, i32
  }
  func.func @transform_6(%arg0: i32) -> (i32, i32) {
    %c0_i32 = arith.constant 0 : i32
    %c0_i32_0 = arith.constant 0 : i32
    %c0_i32_1 = arith.constant 0 : i32
    return %c0_i32, %c0_i32_0 : i32, i32
  }
  func.func @transform_7(%arg0: i32) -> (i32, i32) {
    %c0_i32 = arith.constant 0 : i32
    %c0_i32_0 = arith.constant 0 : i32
    %c0_i32_1 = arith.constant 0 : i32
    return %c0_i32, %c0_i32_0 : i32, i32
  }
  func.func @transform_8(%arg0: i32) -> (i32, i32) {
    %c0_i32 = arith.constant 0 : i32
    %c0_i32_0 = arith.constant 0 : i32
    %c0_i32_1 = arith.constant 0 : i32
    return %c0_i32, %c0_i32_0 : i32, i32
  }
  func.func @transform_9(%arg0: i32) -> (i32, i32) {
    %c0_i32 = arith.constant 0 : i32
    %c0_i32_0 = arith.constant 0 : i32
    return %arg0, %c0_i32 : i32, i32
  }
}

module attributes {stable_mosaic.version = 11 : i64} {
  func.func @_pair_heads_kernel(%arg0: i32, %arg1: memref<128x32xf32, #tpu.memory_space<vmem>>, %arg2: memref<128x32xf32, #tpu.memory_space<vmem>>, %arg3: memref<32x74xbf16, #tpu.memory_space<vmem>>, %arg4: memref<1x74xf32, #tpu.memory_space<vmem>>, %arg5: memref<32x120xbf16, #tpu.memory_space<vmem>>, %arg6: memref<1x120xf32, #tpu.memory_space<vmem>>, %arg7: memref<128x74xf32, #tpu.memory_space<vmem>>, %arg8: memref<128x120xf32, #tpu.memory_space<vmem>>) attributes {dimension_semantics = [#tpu.dimension_semantics<parallel>], iteration_bounds = array<i64: 2>, scalar_prefetch = 0 : i64, scratch_operands = 0 : i64, tpu.core_type = #tpu.core_type<tc>, window_params = [{transform_indices = @transform_0, window_bounds = array<i64: 128, 32>}, {transform_indices = @transform_1, window_bounds = array<i64: 128, 32>}, {pipeline_mode = #tpu.pipeline_mode<synchronous>, transform_indices = @transform_2, window_bounds = array<i64: 32, 74>}, {pipeline_mode = #tpu.pipeline_mode<synchronous>, transform_indices = @transform_3, window_bounds = array<i64: 1, 74>}, {pipeline_mode = #tpu.pipeline_mode<synchronous>, transform_indices = @transform_4, window_bounds = array<i64: 32, 120>}, {pipeline_mode = #tpu.pipeline_mode<synchronous>, transform_indices = @transform_5, window_bounds = array<i64: 1, 120>}, {transform_indices = @transform_6, window_bounds = array<i64: 128, 74>}, {transform_indices = @transform_7, window_bounds = array<i64: 128, 120>}]} {
    %c0 = arith.constant 0 : index
    %c0_0 = arith.constant 0 : index
    %0 = vector.load %arg2[%c0, %c0_0] : memref<128x32xf32, #tpu.memory_space<vmem>>, vector<128x32xf32>
    %c0_1 = arith.constant 0 : index
    %c0_2 = arith.constant 0 : index
    %1 = vector.load %arg3[%c0_1, %c0_2] : memref<32x74xbf16, #tpu.memory_space<vmem>>, vector<32x74xbf16>
    %2 = arith.truncf %0 : vector<128x32xf32> to vector<128x32xbf16>
    %cst = arith.constant dense<0.000000e+00> : vector<128x74xf32>
    %3 = tpu.matmul %2, %1, %cst {dimension_numbers = #tpu.dot_dimension_numbers<[1], [0], [0], [1], [0, 0, 1, 1], [], []>} : vector<128x32xbf16>, vector<32x74xbf16>, vector<128x74xf32> -> vector<128x74xf32>
    %c0_3 = arith.constant 0 : index
    %c0_4 = arith.constant 0 : index
    %4 = vector.load %arg4[%c0_3, %c0_4] : memref<1x74xf32, #tpu.memory_space<vmem>>, vector<1x74xf32>
    %5 = vector.broadcast %4 : vector<1x74xf32> to vector<128x74xf32>
    %6 = arith.addf %3, %5 : vector<128x74xf32>
    %c0_5 = arith.constant 0 : index
    %c0_6 = arith.constant 0 : index
    %7 = vector.load %arg7[%c0_5, %c0_6] : memref<128x74xf32, #tpu.memory_space<vmem>>, vector<128x74xf32>
    tpu.vector_store %arg7[%c0_5, %c0_6], %6 {strides = array<i32>} : memref<128x74xf32, #tpu.memory_space<vmem>>, vector<128x74xf32>,
    %c0_7 = arith.constant 0 : index
    %c0_8 = arith.constant 0 : index
    %8 = vector.load %arg1[%c0_7, %c0_8] : memref<128x32xf32, #tpu.memory_space<vmem>>, vector<128x32xf32>
    %c0_9 = arith.constant 0 : index
    %c0_10 = arith.constant 0 : index
    %9 = vector.load %arg5[%c0_9, %c0_10] : memref<32x120xbf16, #tpu.memory_space<vmem>>, vector<32x120xbf16>
    %10 = arith.truncf %8 : vector<128x32xf32> to vector<128x32xbf16>
    %cst_11 = arith.constant dense<0.000000e+00> : vector<128x120xf32>
    %11 = tpu.matmul %10, %9, %cst_11 {dimension_numbers = #tpu.dot_dimension_numbers<[1], [0], [0], [1], [0, 0, 1, 1], [], []>} : vector<128x32xbf16>, vector<32x120xbf16>, vector<128x120xf32> -> vector<128x120xf32>
    %c0_12 = arith.constant 0 : index
    %c0_13 = arith.constant 0 : index
    %12 = vector.load %arg6[%c0_12, %c0_13] : memref<1x120xf32, #tpu.memory_space<vmem>>, vector<1x120xf32>
    %13 = vector.broadcast %12 : vector<1x120xf32> to vector<128x120xf32>
    %14 = arith.addf %11, %13 : vector<128x120xf32>
    %c0_14 = arith.constant 0 : index
    %c0_15 = arith.constant 0 : index
    %15 = vector.load %arg8[%c0_14, %c0_15] : memref<128x120xf32, #tpu.memory_space<vmem>>, vector<128x120xf32>
    tpu.vector_store %arg8[%c0_14, %c0_15], %14 {strides = array<i32>} : memref<128x120xf32, #tpu.memory_space<vmem>>, vector<128x120xf32>,
    return
  }
  func.func @transform_0(%arg0: i32) -> (i32, i32) {
    %c0_i32 = arith.constant 0 : i32
    %c0_i32_0 = arith.constant 0 : i32
    return %arg0, %c0_i32 : i32, i32
  }
  func.func @transform_1(%arg0: i32) -> (i32, i32) {
    %c0_i32 = arith.constant 0 : i32
    %c0_i32_0 = arith.constant 0 : i32
    return %arg0, %c0_i32 : i32, i32
  }
  func.func @transform_2(%arg0: i32) -> (i32, i32) {
    %c0_i32 = arith.constant 0 : i32
    %c0_i32_0 = arith.constant 0 : i32
    %c0_i32_1 = arith.constant 0 : i32
    return %c0_i32, %c0_i32_0 : i32, i32
  }
  func.func @transform_3(%arg0: i32) -> (i32, i32) {
    %c0_i32 = arith.constant 0 : i32
    %c0_i32_0 = arith.constant 0 : i32
    %c0_i32_1 = arith.constant 0 : i32
    return %c0_i32, %c0_i32_0 : i32, i32
  }
  func.func @transform_4(%arg0: i32) -> (i32, i32) {
    %c0_i32 = arith.constant 0 : i32
    %c0_i32_0 = arith.constant 0 : i32
    %c0_i32_1 = arith.constant 0 : i32
    return %c0_i32, %c0_i32_0 : i32, i32
  }
  func.func @transform_5(%arg0: i32) -> (i32, i32) {
    %c0_i32 = arith.constant 0 : i32
    %c0_i32_0 = arith.constant 0 : i32
    %c0_i32_1 = arith.constant 0 : i32
    return %c0_i32, %c0_i32_0 : i32, i32
  }
  func.func @transform_6(%arg0: i32) -> (i32, i32) {
    %c0_i32 = arith.constant 0 : i32
    %c0_i32_0 = arith.constant 0 : i32
    return %arg0, %c0_i32 : i32, i32
  }
  func.func @transform_7(%arg0: i32) -> (i32, i32) {
    %c0_i32 = arith.constant 0 : i32
    %c0_i32_0 = arith.constant 0 : i32
    return %arg0, %c0_i32 : i32, i32
  }
}

module attributes {stable_mosaic.version = 11 : i64} {
  func.func @_linear_kernel(%arg0: i32, %arg1: memref<32x48xf32, #tpu.memory_space<vmem>>, %arg2: memref<48x32xbf16, #tpu.memory_space<vmem>>, %arg3: memref<1x32xf32, #tpu.memory_space<vmem>>, %arg4: memref<32x32xf32, #tpu.memory_space<vmem>>) attributes {dimension_semantics = [#tpu.dimension_semantics<parallel>], iteration_bounds = array<i64: 2>, scalar_prefetch = 0 : i64, scratch_operands = 0 : i64, tpu.core_type = #tpu.core_type<tc>, window_params = [{transform_indices = @transform_0, window_bounds = array<i64: 32, 48>}, {pipeline_mode = #tpu.pipeline_mode<synchronous>, transform_indices = @transform_1, window_bounds = array<i64: 48, 32>}, {pipeline_mode = #tpu.pipeline_mode<synchronous>, transform_indices = @transform_2, window_bounds = array<i64: 1, 32>}, {transform_indices = @transform_3, window_bounds = array<i64: 32, 32>}]} {
    %c0 = arith.constant 0 : index
    %c0_0 = arith.constant 0 : index
    %0 = vector.load %arg1[%c0, %c0_0] : memref<32x48xf32, #tpu.memory_space<vmem>>, vector<32x48xf32>
    %c0_1 = arith.constant 0 : index
    %c0_2 = arith.constant 0 : index
    %1 = vector.load %arg2[%c0_1, %c0_2] : memref<48x32xbf16, #tpu.memory_space<vmem>>, vector<48x32xbf16>
    %2 = arith.truncf %0 : vector<32x48xf32> to vector<32x48xbf16>
    %cst = arith.constant dense<0.000000e+00> : vector<32x32xf32>
    %3 = tpu.matmul %2, %1, %cst {dimension_numbers = #tpu.dot_dimension_numbers<[1], [0], [0], [1], [0, 0, 1, 1], [], []>} : vector<32x48xbf16>, vector<48x32xbf16>, vector<32x32xf32> -> vector<32x32xf32>
    %c0_3 = arith.constant 0 : index
    %c0_4 = arith.constant 0 : index
    %4 = vector.load %arg3[%c0_3, %c0_4] : memref<1x32xf32, #tpu.memory_space<vmem>>, vector<1x32xf32>
    %5 = vector.broadcast %4 : vector<1x32xf32> to vector<32x32xf32>
    %6 = arith.addf %3, %5 : vector<32x32xf32>
    %c0_5 = arith.constant 0 : index
    %c0_6 = arith.constant 0 : index
    %7 = vector.load %arg4[%c0_5, %c0_6] : memref<32x32xf32, #tpu.memory_space<vmem>>, vector<32x32xf32>
    tpu.vector_store %arg4[%c0_5, %c0_6], %6 {strides = array<i32>} : memref<32x32xf32, #tpu.memory_space<vmem>>, vector<32x32xf32>,
    return
  }
  func.func @transform_0(%arg0: i32) -> (i32, i32) {
    %c0_i32 = arith.constant 0 : i32
    %c0_i32_0 = arith.constant 0 : i32
    return %arg0, %c0_i32 : i32, i32
  }
  func.func @transform_1(%arg0: i32) -> (i32, i32) {
    %c0_i32 = arith.constant 0 : i32
    %c0_i32_0 = arith.constant 0 : i32
    %c0_i32_1 = arith.constant 0 : i32
    return %c0_i32, %c0_i32_0 : i32, i32
  }
  func.func @transform_2(%arg0: i32) -> (i32, i32) {
    %c0_i32 = arith.constant 0 : i32
    %c0_i32_0 = arith.constant 0 : i32
    %c0_i32_1 = arith.constant 0 : i32
    return %c0_i32, %c0_i32_0 : i32, i32
  }
  func.func @transform_3(%arg0: i32) -> (i32, i32) {
    %c0_i32 = arith.constant 0 : i32
    %c0_i32_0 = arith.constant 0 : i32
    return %arg0, %c0_i32 : i32, i32
  }
}

module attributes {stable_mosaic.version = 11 : i64} {
  func.func @_msa_path_kernel(%arg0: i32, %arg1: memref<32x32xf32, #tpu.memory_space<vmem>>, %arg2: memref<32x32xbf16, #tpu.memory_space<vmem>>, %arg3: memref<1x32xf32, #tpu.memory_space<vmem>>, %arg4: memref<32x21xbf16, #tpu.memory_space<vmem>>, %arg5: memref<1x21xf32, #tpu.memory_space<vmem>>, %arg6: memref<32x32xf32, #tpu.memory_space<vmem>>, %arg7: memref<32x21xf32, #tpu.memory_space<vmem>>) attributes {dimension_semantics = [#tpu.dimension_semantics<parallel>], iteration_bounds = array<i64: 2>, scalar_prefetch = 0 : i64, scratch_operands = 0 : i64, tpu.core_type = #tpu.core_type<tc>, window_params = [{transform_indices = @transform_0, window_bounds = array<i64: 32, 32>}, {pipeline_mode = #tpu.pipeline_mode<synchronous>, transform_indices = @transform_1, window_bounds = array<i64: 32, 32>}, {pipeline_mode = #tpu.pipeline_mode<synchronous>, transform_indices = @transform_2, window_bounds = array<i64: 1, 32>}, {pipeline_mode = #tpu.pipeline_mode<synchronous>, transform_indices = @transform_3, window_bounds = array<i64: 32, 21>}, {pipeline_mode = #tpu.pipeline_mode<synchronous>, transform_indices = @transform_4, window_bounds = array<i64: 1, 21>}, {transform_indices = @transform_5, window_bounds = array<i64: 32, 32>}, {transform_indices = @transform_6, window_bounds = array<i64: 32, 21>}]} {
    %c0 = arith.constant 0 : index
    %c0_0 = arith.constant 0 : index
    %0 = vector.load %arg1[%c0, %c0_0] : memref<32x32xf32, #tpu.memory_space<vmem>>, vector<32x32xf32>
    %c0_1 = arith.constant 0 : index
    %c0_2 = arith.constant 0 : index
    %1 = vector.load %arg2[%c0_1, %c0_2] : memref<32x32xbf16, #tpu.memory_space<vmem>>, vector<32x32xbf16>
    %2 = arith.truncf %0 : vector<32x32xf32> to vector<32x32xbf16>
    %cst = arith.constant dense<0.000000e+00> : vector<32x32xf32>
    %3 = tpu.matmul %2, %1, %cst {dimension_numbers = #tpu.dot_dimension_numbers<[1], [0], [0], [1], [0, 0, 1, 1], [], []>} : vector<32x32xbf16>, vector<32x32xbf16>, vector<32x32xf32> -> vector<32x32xf32>
    %c0_3 = arith.constant 0 : index
    %c0_4 = arith.constant 0 : index
    %4 = vector.load %arg3[%c0_3, %c0_4] : memref<1x32xf32, #tpu.memory_space<vmem>>, vector<1x32xf32>
    %5 = vector.broadcast %4 : vector<1x32xf32> to vector<32x32xf32>
    %6 = arith.addf %3, %5 : vector<32x32xf32>
    %cst_5 = arith.constant 0.000000e+00 : f32
    %7 = vector.broadcast %cst_5 : f32 to vector<32x32xf32>
    %8 = arith.maximumf %6, %7 : vector<32x32xf32>
    %9 = arith.addf %0, %8 : vector<32x32xf32>
    %c0_6 = arith.constant 0 : index
    %c0_7 = arith.constant 0 : index
    %10 = vector.load %arg2[%c0_6, %c0_7] : memref<32x32xbf16, #tpu.memory_space<vmem>>, vector<32x32xbf16>
    %11 = arith.truncf %9 : vector<32x32xf32> to vector<32x32xbf16>
    %cst_8 = arith.constant dense<0.000000e+00> : vector<32x32xf32>
    %12 = tpu.matmul %11, %10, %cst_8 {dimension_numbers = #tpu.dot_dimension_numbers<[1], [0], [0], [1], [0, 0, 1, 1], [], []>} : vector<32x32xbf16>, vector<32x32xbf16>, vector<32x32xf32> -> vector<32x32xf32>
    %c0_9 = arith.constant 0 : index
    %c0_10 = arith.constant 0 : index
    %13 = vector.load %arg3[%c0_9, %c0_10] : memref<1x32xf32, #tpu.memory_space<vmem>>, vector<1x32xf32>
    %14 = vector.broadcast %13 : vector<1x32xf32> to vector<32x32xf32>
    %15 = arith.addf %12, %14 : vector<32x32xf32>
    %cst_11 = arith.constant 0.000000e+00 : f32
    %16 = vector.broadcast %cst_11 : f32 to vector<32x32xf32>
    %17 = arith.maximumf %15, %16 : vector<32x32xf32>
    %18 = arith.addf %9, %17 : vector<32x32xf32>
    %c0_12 = arith.constant 0 : index
    %c0_13 = arith.constant 0 : index
    %19 = vector.load %arg6[%c0_12, %c0_13] : memref<32x32xf32, #tpu.memory_space<vmem>>, vector<32x32xf32>
    tpu.vector_store %arg6[%c0_12, %c0_13], %18 {strides = array<i32>} : memref<32x32xf32, #tpu.memory_space<vmem>>, vector<32x32xf32>,
    %c0_14 = arith.constant 0 : index
    %c0_15 = arith.constant 0 : index
    %20 = vector.load %arg4[%c0_14, %c0_15] : memref<32x21xbf16, #tpu.memory_space<vmem>>, vector<32x21xbf16>
    %21 = arith.truncf %18 : vector<32x32xf32> to vector<32x32xbf16>
    %cst_16 = arith.constant dense<0.000000e+00> : vector<32x21xf32>
    %22 = tpu.matmul %21, %20, %cst_16 {dimension_numbers = #tpu.dot_dimension_numbers<[1], [0], [0], [1], [0, 0, 1, 1], [], []>} : vector<32x32xbf16>, vector<32x21xbf16>, vector<32x21xf32> -> vector<32x21xf32>
    %c0_17 = arith.constant 0 : index
    %c0_18 = arith.constant 0 : index
    %23 = vector.load %arg5[%c0_17, %c0_18] : memref<1x21xf32, #tpu.memory_space<vmem>>, vector<1x21xf32>
    %24 = vector.broadcast %23 : vector<1x21xf32> to vector<32x21xf32>
    %25 = arith.addf %22, %24 : vector<32x21xf32>
    %c0_19 = arith.constant 0 : index
    %c0_20 = arith.constant 0 : index
    %26 = vector.load %arg7[%c0_19, %c0_20] : memref<32x21xf32, #tpu.memory_space<vmem>>, vector<32x21xf32>
    tpu.vector_store %arg7[%c0_19, %c0_20], %25 {strides = array<i32>} : memref<32x21xf32, #tpu.memory_space<vmem>>, vector<32x21xf32>,
    return
  }
  func.func @transform_0(%arg0: i32) -> (i32, i32) {
    %c0_i32 = arith.constant 0 : i32
    %c0_i32_0 = arith.constant 0 : i32
    return %arg0, %c0_i32 : i32, i32
  }
  func.func @transform_1(%arg0: i32) -> (i32, i32) {
    %c0_i32 = arith.constant 0 : i32
    %c0_i32_0 = arith.constant 0 : i32
    %c0_i32_1 = arith.constant 0 : i32
    return %c0_i32, %c0_i32_0 : i32, i32
  }
  func.func @transform_2(%arg0: i32) -> (i32, i32) {
    %c0_i32 = arith.constant 0 : i32
    %c0_i32_0 = arith.constant 0 : i32
    %c0_i32_1 = arith.constant 0 : i32
    return %c0_i32, %c0_i32_0 : i32, i32
  }
  func.func @transform_3(%arg0: i32) -> (i32, i32) {
    %c0_i32 = arith.constant 0 : i32
    %c0_i32_0 = arith.constant 0 : i32
    %c0_i32_1 = arith.constant 0 : i32
    return %c0_i32, %c0_i32_0 : i32, i32
  }
  func.func @transform_4(%arg0: i32) -> (i32, i32) {
    %c0_i32 = arith.constant 0 : i32
    %c0_i32_0 = arith.constant 0 : i32
    %c0_i32_1 = arith.constant 0 : i32
    return %c0_i32, %c0_i32_0 : i32, i32
  }
  func.func @transform_5(%arg0: i32) -> (i32, i32) {
    %c0_i32 = arith.constant 0 : i32
    %c0_i32_0 = arith.constant 0 : i32
    return %arg0, %c0_i32 : i32, i32
  }
  func.func @transform_6(%arg0: i32) -> (i32, i32) {
    %c0_i32 = arith.constant 0 : i32
    %c0_i32_0 = arith.constant 0 : i32
    return %arg0, %c0_i32 : i32, i32
  }
}

module attributes {stable_mosaic.version = 11 : i64} {
  func.func @_state_path_kernel(%arg0: i32, %arg1: memref<8x16xf32, #tpu.memory_space<vmem>>, %arg2: memref<8x22xf32, #tpu.memory_space<vmem>>, %arg3: memref<22x16xbf16, #tpu.memory_space<vmem>>, %arg4: memref<1x16xf32, #tpu.memory_space<vmem>>, %arg5: memref<16x16xbf16, #tpu.memory_space<vmem>>, %arg6: memref<1x16xf32, #tpu.memory_space<vmem>>, %arg7: memref<16x23xbf16, #tpu.memory_space<vmem>>, %arg8: memref<1x23xf32, #tpu.memory_space<vmem>>, %arg9: memref<8x16xf32, #tpu.memory_space<vmem>>, %arg10: memref<2x8x23xf32, #tpu.memory_space<vmem>>) attributes {dimension_semantics = [#tpu.dimension_semantics<parallel>], iteration_bounds = array<i64: 2>, scalar_prefetch = 0 : i64, scratch_operands = 0 : i64, tpu.core_type = #tpu.core_type<tc>, window_params = [{transform_indices = @transform_0, window_bounds = array<i64: 8, 16>}, {transform_indices = @transform_1, window_bounds = array<i64: 8, 22>}, {pipeline_mode = #tpu.pipeline_mode<synchronous>, transform_indices = @transform_2, window_bounds = array<i64: 22, 16>}, {pipeline_mode = #tpu.pipeline_mode<synchronous>, transform_indices = @transform_3, window_bounds = array<i64: 1, 16>}, {pipeline_mode = #tpu.pipeline_mode<synchronous>, transform_indices = @transform_4, window_bounds = array<i64: 16, 16>}, {pipeline_mode = #tpu.pipeline_mode<synchronous>, transform_indices = @transform_5, window_bounds = array<i64: 1, 16>}, {pipeline_mode = #tpu.pipeline_mode<synchronous>, transform_indices = @transform_6, window_bounds = array<i64: 16, 23>}, {pipeline_mode = #tpu.pipeline_mode<synchronous>, transform_indices = @transform_7, window_bounds = array<i64: 1, 23>}, {transform_indices = @transform_8, window_bounds = array<i64: 8, 16>}, {transform_indices = @transform_9, window_bounds = array<i64: 2, 8, 23>}]} {
    %c0 = arith.constant 0 : index
    %c0_0 = arith.constant 0 : index
    %0 = vector.load %arg1[%c0, %c0_0] : memref<8x16xf32, #tpu.memory_space<vmem>>, vector<8x16xf32>
    %c0_1 = arith.constant 0 : index
    %c0_2 = arith.constant 0 : index
    %1 = vector.load %arg2[%c0_1, %c0_2] : memref<8x22xf32, #tpu.memory_space<vmem>>, vector<8x22xf32>
    %c0_3 = arith.constant 0 : index
    %c0_4 = arith.constant 0 : index
    %2 = vector.load %arg3[%c0_3, %c0_4] : memref<22x16xbf16, #tpu.memory_space<vmem>>, vector<22x16xbf16>
    %3 = arith.truncf %1 : vector<8x22xf32> to vector<8x22xbf16>
    %cst = arith.constant dense<0.000000e+00> : vector<8x16xf32>
    %4 = tpu.matmul %3, %2, %cst {dimension_numbers = #tpu.dot_dimension_numbers<[1], [0], [0], [1], [0, 0, 1, 1], [], []>} : vector<8x22xbf16>, vector<22x16xbf16>, vector<8x16xf32> -> vector<8x16xf32>
    %5 = arith.addf %0, %4 : vector<8x16xf32>
    %c0_5 = arith.constant 0 : index
    %c0_6 = arith.constant 0 : index
    %6 = vector.load %arg4[%c0_5, %c0_6] : memref<1x16xf32, #tpu.memory_space<vmem>>, vector<1x16xf32>
    %7 = vector.broadcast %6 : vector<1x16xf32> to vector<8x16xf32>
    %8 = arith.addf %5, %7 : vector<8x16xf32>
    %c0_7 = arith.constant 0 : index
    %c0_8 = arith.constant 0 : index
    %9 = vector.load %arg5[%c0_7, %c0_8] : memref<16x16xbf16, #tpu.memory_space<vmem>>, vector<16x16xbf16>
    %10 = arith.truncf %8 : vector<8x16xf32> to vector<8x16xbf16>
    %cst_9 = arith.constant dense<0.000000e+00> : vector<8x16xf32>
    %11 = tpu.matmul %10, %9, %cst_9 {dimension_numbers = #tpu.dot_dimension_numbers<[1], [0], [0], [1], [0, 0, 1, 1], [], []>} : vector<8x16xbf16>, vector<16x16xbf16>, vector<8x16xf32> -> vector<8x16xf32>
    %c0_10 = arith.constant 0 : index
    %c0_11 = arith.constant 0 : index
    %12 = vector.load %arg6[%c0_10, %c0_11] : memref<1x16xf32, #tpu.memory_space<vmem>>, vector<1x16xf32>
    %13 = vector.broadcast %12 : vector<1x16xf32> to vector<8x16xf32>
    %14 = arith.addf %11, %13 : vector<8x16xf32>
    %cst_12 = arith.constant 0.000000e+00 : f32
    %15 = vector.broadcast %cst_12 : f32 to vector<8x16xf32>
    %16 = arith.maximumf %14, %15 : vector<8x16xf32>
    %17 = arith.addf %8, %16 : vector<8x16xf32>
    %c0_13 = arith.constant 0 : index
    %c0_14 = arith.constant 0 : index
    %18 = vector.load %arg7[%c0_13, %c0_14] : memref<16x23xbf16, #tpu.memory_space<vmem>>, vector<16x23xbf16>
    %19 = arith.truncf %17 : vector<8x16xf32> to vector<8x16xbf16>
    %cst_15 = arith.constant dense<0.000000e+00> : vector<8x23xf32>
    %20 = tpu.matmul %19, %18, %cst_15 {dimension_numbers = #tpu.dot_dimension_numbers<[1], [0], [0], [1], [0, 0, 1, 1], [], []>} : vector<8x16xbf16>, vector<16x23xbf16>, vector<8x23xf32> -> vector<8x23xf32>
    %c0_16 = arith.constant 0 : index
    %c0_17 = arith.constant 0 : index
    %21 = vector.load %arg8[%c0_16, %c0_17] : memref<1x23xf32, #tpu.memory_space<vmem>>, vector<1x23xf32>
    %22 = vector.broadcast %21 : vector<1x23xf32> to vector<8x23xf32>
    %23 = arith.addf %20, %22 : vector<8x23xf32>
    %c0_18 = arith.constant 0 : index
    %c0_19 = arith.constant 0 : index
    %c0_20 = arith.constant 0 : index
    %24 = vector.load %arg10[%c0_18, %c0_19, %c0_20] : memref<2x8x23xf32, #tpu.memory_space<vmem>>, vector<1x8x23xf32>
    %25 = vector.shape_cast %24 : vector<1x8x23xf32> to vector<8x23xf32>
    %26 = vector.shape_cast %23 : vector<8x23xf32> to vector<1x8x23xf32>
    tpu.vector_store %arg10[%c0_18, %c0_19, %c0_20], %26 {strides = array<i32>} : memref<2x8x23xf32, #tpu.memory_space<vmem>>, vector<1x8x23xf32>,
    %c0_21 = arith.constant 0 : index
    %c0_22 = arith.constant 0 : index
    %27 = vector.load %arg5[%c0_21, %c0_22] : memref<16x16xbf16, #tpu.memory_space<vmem>>, vector<16x16xbf16>
    %28 = arith.truncf %17 : vector<8x16xf32> to vector<8x16xbf16>
    %cst_23 = arith.constant dense<0.000000e+00> : vector<8x16xf32>
    %29 = tpu.matmul %28, %27, %cst_23 {dimension_numbers = #tpu.dot_dimension_numbers<[1], [0], [0], [1], [0, 0, 1, 1], [], []>} : vector<8x16xbf16>, vector<16x16xbf16>, vector<8x16xf32> -> vector<8x16xf32>
    %c0_24 = arith.constant 0 : index
    %c0_25 = arith.constant 0 : index
    %30 = vector.load %arg6[%c0_24, %c0_25] : memref<1x16xf32, #tpu.memory_space<vmem>>, vector<1x16xf32>
    %31 = vector.broadcast %30 : vector<1x16xf32> to vector<8x16xf32>
    %32 = arith.addf %29, %31 : vector<8x16xf32>
    %cst_26 = arith.constant 0.000000e+00 : f32
    %33 = vector.broadcast %cst_26 : f32 to vector<8x16xf32>
    %34 = arith.maximumf %32, %33 : vector<8x16xf32>
    %35 = arith.addf %17, %34 : vector<8x16xf32>
    %c0_27 = arith.constant 0 : index
    %c0_28 = arith.constant 0 : index
    %36 = vector.load %arg7[%c0_27, %c0_28] : memref<16x23xbf16, #tpu.memory_space<vmem>>, vector<16x23xbf16>
    %37 = arith.truncf %35 : vector<8x16xf32> to vector<8x16xbf16>
    %cst_29 = arith.constant dense<0.000000e+00> : vector<8x23xf32>
    %38 = tpu.matmul %37, %36, %cst_29 {dimension_numbers = #tpu.dot_dimension_numbers<[1], [0], [0], [1], [0, 0, 1, 1], [], []>} : vector<8x16xbf16>, vector<16x23xbf16>, vector<8x23xf32> -> vector<8x23xf32>
    %c0_30 = arith.constant 0 : index
    %c0_31 = arith.constant 0 : index
    %39 = vector.load %arg8[%c0_30, %c0_31] : memref<1x23xf32, #tpu.memory_space<vmem>>, vector<1x23xf32>
    %40 = vector.broadcast %39 : vector<1x23xf32> to vector<8x23xf32>
    %41 = arith.addf %38, %40 : vector<8x23xf32>
    %c1 = arith.constant 1 : index
    %c0_32 = arith.constant 0 : index
    %c0_33 = arith.constant 0 : index
    %42 = vector.load %arg10[%c1, %c0_32, %c0_33] : memref<2x8x23xf32, #tpu.memory_space<vmem>>, vector<1x8x23xf32>
    %43 = vector.shape_cast %42 : vector<1x8x23xf32> to vector<8x23xf32>
    %44 = vector.shape_cast %41 : vector<8x23xf32> to vector<1x8x23xf32>
    tpu.vector_store %arg10[%c1, %c0_32, %c0_33], %44 {strides = array<i32>} : memref<2x8x23xf32, #tpu.memory_space<vmem>>, vector<1x8x23xf32>,
    %c0_34 = arith.constant 0 : index
    %c0_35 = arith.constant 0 : index
    %45 = vector.load %arg9[%c0_34, %c0_35] : memref<8x16xf32, #tpu.memory_space<vmem>>, vector<8x16xf32>
    tpu.vector_store %arg9[%c0_34, %c0_35], %35 {strides = array<i32>} : memref<8x16xf32, #tpu.memory_space<vmem>>, vector<8x16xf32>,
    return
  }
  func.func @transform_0(%arg0: i32) -> (i32, i32) {
    %c0_i32 = arith.constant 0 : i32
    %c0_i32_0 = arith.constant 0 : i32
    return %arg0, %c0_i32 : i32, i32
  }
  func.func @transform_1(%arg0: i32) -> (i32, i32) {
    %c0_i32 = arith.constant 0 : i32
    %c0_i32_0 = arith.constant 0 : i32
    return %arg0, %c0_i32 : i32, i32
  }
  func.func @transform_2(%arg0: i32) -> (i32, i32) {
    %c0_i32 = arith.constant 0 : i32
    %c0_i32_0 = arith.constant 0 : i32
    %c0_i32_1 = arith.constant 0 : i32
    return %c0_i32, %c0_i32_0 : i32, i32
  }
  func.func @transform_3(%arg0: i32) -> (i32, i32) {
    %c0_i32 = arith.constant 0 : i32
    %c0_i32_0 = arith.constant 0 : i32
    %c0_i32_1 = arith.constant 0 : i32
    return %c0_i32, %c0_i32_0 : i32, i32
  }
  func.func @transform_4(%arg0: i32) -> (i32, i32) {
    %c0_i32 = arith.constant 0 : i32
    %c0_i32_0 = arith.constant 0 : i32
    %c0_i32_1 = arith.constant 0 : i32
    return %c0_i32, %c0_i32_0 : i32, i32
  }
  func.func @transform_5(%arg0: i32) -> (i32, i32) {
    %c0_i32 = arith.constant 0 : i32
    %c0_i32_0 = arith.constant 0 : i32
    %c0_i32_1 = arith.constant 0 : i32
    return %c0_i32, %c0_i32_0 : i32, i32
  }
  func.func @transform_6(%arg0: i32) -> (i32, i32) {
    %c0_i32 = arith.constant 0 : i32
    %c0_i32_0 = arith.constant 0 : i32
    %c0_i32_1 = arith.constant 0 : i32
    return %c0_i32, %c0_i32_0 : i32, i32
  }
  func.func @transform_7(%arg0: i32) -> (i32, i32) {
    %c0_i32 = arith.constant 0 : i32
    %c0_i32_0 = arith.constant 0 : i32
    %c0_i32_1 = arith.constant 0 : i32
    return %c0_i32, %c0_i32_0 : i32, i32
  }
  func.func @transform_8(%arg0: i32) -> (i32, i32) {
    %c0_i32 = arith.constant 0 : i32
    %c0_i32_0 = arith.constant 0 : i32
    return %arg0, %c0_i32 : i32, i32
  }
  func.func @transform_9(%arg0: i32) -> (i32, i32, i32) {
    %c0_i32 = arith.constant 0 : i32
    %c0_i32_0 = arith.constant 0 : i32
    %c0_i32_1 = arith.constant 0 : i32
    return %c0_i32, %arg0, %c0_i32_0 : i32, i32, i32
  }
}

module attributes {stable_mosaic.version = 11 : i64} {
  func.func @_state_heads_kernel(%arg0: i32, %arg1: memref<8x16xf32, #tpu.memory_space<vmem>>, %arg2: memref<8x32xf32, #tpu.memory_space<vmem>>, %arg3: memref<1x16xf32, #tpu.memory_space<vmem>>, %arg4: memref<1x16xf32, #tpu.memory_space<vmem>>, %arg5: memref<16x50xbf16, #tpu.memory_space<vmem>>, %arg6: memref<1x50xf32, #tpu.memory_space<vmem>>, %arg7: memref<32x1xbf16, #tpu.memory_space<vmem>>, %arg8: memref<16x1xbf16, #tpu.memory_space<vmem>>, %arg9: memref<1x1xf32, #tpu.memory_space<vmem>>, %arg10: memref<8x50xf32, #tpu.memory_space<vmem>>, %arg11: memref<8x1xf32, #tpu.memory_space<vmem>>) attributes {dimension_semantics = [#tpu.dimension_semantics<parallel>], iteration_bounds = array<i64: 2>, scalar_prefetch = 0 : i64, scratch_operands = 0 : i64, tpu.core_type = #tpu.core_type<tc>, window_params = [{transform_indices = @transform_0, window_bounds = array<i64: 8, 16>}, {transform_indices = @transform_1, window_bounds = array<i64: 8, 32>}, {pipeline_mode = #tpu.pipeline_mode<synchronous>, transform_indices = @transform_2, window_bounds = array<i64: 1, 16>}, {pipeline_mode = #tpu.pipeline_mode<synchronous>, transform_indices = @transform_3, window_bounds = array<i64: 1, 16>}, {pipeline_mode = #tpu.pipeline_mode<synchronous>, transform_indices = @transform_4, window_bounds = array<i64: 16, 50>}, {pipeline_mode = #tpu.pipeline_mode<synchronous>, transform_indices = @transform_5, window_bounds = array<i64: 1, 50>}, {pipeline_mode = #tpu.pipeline_mode<synchronous>, transform_indices = @transform_6, window_bounds = array<i64: 32, 1>}, {pipeline_mode = #tpu.pipeline_mode<synchronous>, transform_indices = @transform_7, window_bounds = array<i64: 16, 1>}, {pipeline_mode = #tpu.pipeline_mode<synchronous>, transform_indices = @transform_8, window_bounds = array<i64: 1, 1>}, {transform_indices = @transform_9, window_bounds = array<i64: 8, 50>}, {transform_indices = @transform_10, window_bounds = array<i64: 8, 1>}]} {
    %c0 = arith.constant 0 : index
    %c0_0 = arith.constant 0 : index
    %0 = vector.load %arg1[%c0, %c0_0] : memref<8x16xf32, #tpu.memory_space<vmem>>, vector<8x16xf32>
    %cst = arith.constant dense<0.000000e+00> : vector<8xf32>
    %1 = vector.multi_reduction <add>, %0, %cst [1] : vector<8x16xf32> to vector<8xf32>
    %2 = vector.shape_cast %1 : vector<8xf32> to vector<8x1xf32>
    %cst_1 = arith.constant 1.600000e+01 : f32
    %3 = vector.broadcast %cst_1 : f32 to vector<8x1xf32>
    %4 = arith.divf %2, %3 : vector<8x1xf32>
    %5 = vector.broadcast %4 : vector<8x1xf32> to vector<8x16xf32>
    %6 = arith.subf %0, %5 : vector<8x16xf32>
    %7 = arith.mulf %6, %6 : vector<8x16xf32>
    %cst_2 = arith.constant dense<0.000000e+00> : vector<8xf32>
    %8 = vector.multi_reduction <add>, %7, %cst_2 [1] : vector<8x16xf32> to vector<8xf32>
    %9 = vector.shape_cast %8 : vector<8xf32> to vector<8x1xf32>
    %cst_3 = arith.constant 1.600000e+01 : f32
    %10 = vector.broadcast %cst_3 : f32 to vector<8x1xf32>
    %11 = arith.divf %9, %10 : vector<8x1xf32>
    %12 = vector.broadcast %4 : vector<8x1xf32> to vector<8x16xf32>
    %13 = arith.subf %0, %12 : vector<8x16xf32>
    %cst_4 = arith.constant 9.99999974E-6 : f32
    %14 = vector.broadcast %cst_4 : f32 to vector<8x1xf32>
    %15 = arith.addf %11, %14 : vector<8x1xf32>
    %16 = math.rsqrt %15 : vector<8x1xf32>
    %17 = vector.broadcast %16 : vector<8x1xf32> to vector<8x16xf32>
    %18 = arith.mulf %13, %17 : vector<8x16xf32>
    %c0_5 = arith.constant 0 : index
    %c0_6 = arith.constant 0 : index
    %19 = vector.load %arg3[%c0_5, %c0_6] : memref<1x16xf32, #tpu.memory_space<vmem>>, vector<1x16xf32>
    %20 = vector.broadcast %19 : vector<1x16xf32> to vector<8x16xf32>
    %21 = arith.mulf %18, %20 : vector<8x16xf32>
    %c0_7 = arith.constant 0 : index
    %c0_8 = arith.constant 0 : index
    %22 = vector.load %arg4[%c0_7, %c0_8] : memref<1x16xf32, #tpu.memory_space<vmem>>, vector<1x16xf32>
    %23 = vector.broadcast %22 : vector<1x16xf32> to vector<8x16xf32>
    %24 = arith.addf %21, %23 : vector<8x16xf32>
    %c0_9 = arith.constant 0 : index
    %c0_10 = arith.constant 0 : index
    %25 = vector.load %arg5[%c0_9, %c0_10] : memref<16x50xbf16, #tpu.memory_space<vmem>>, vector<16x50xbf16>
    %26 = arith.truncf %24 : vector<8x16xf32> to vector<8x16xbf16>
    %cst_11 = arith.constant dense<0.000000e+00> : vector<8x50xf32>
    %27 = tpu.matmul %26, %25, %cst_11 {dimension_numbers = #tpu.dot_dimension_numbers<[1], [0], [0], [1], [0, 0, 1, 1], [], []>} : vector<8x16xbf16>, vector<16x50xbf16>, vector<8x50xf32> -> vector<8x50xf32>
    %c0_12 = arith.constant 0 : index
    %c0_13 = arith.constant 0 : index
    %28 = vector.load %arg6[%c0_12, %c0_13] : memref<1x50xf32, #tpu.memory_space<vmem>>, vector<1x50xf32>
    %29 = vector.broadcast %28 : vector<1x50xf32> to vector<8x50xf32>
    %30 = arith.addf %27, %29 : vector<8x50xf32>
    %c0_14 = arith.constant 0 : index
    %c0_15 = arith.constant 0 : index
    %31 = vector.load %arg10[%c0_14, %c0_15] : memref<8x50xf32, #tpu.memory_space<vmem>>, vector<8x50xf32>
    tpu.vector_store %arg10[%c0_14, %c0_15], %30 {strides = array<i32>} : memref<8x50xf32, #tpu.memory_space<vmem>>, vector<8x50xf32>,
    %c0_16 = arith.constant 0 : index
    %c0_17 = arith.constant 0 : index
    %32 = vector.load %arg2[%c0_16, %c0_17] : memref<8x32xf32, #tpu.memory_space<vmem>>, vector<8x32xf32>
    %c0_18 = arith.constant 0 : index
    %c0_19 = arith.constant 0 : index
    %33 = vector.load %arg7[%c0_18, %c0_19] : memref<32x1xbf16, #tpu.memory_space<vmem>>, vector<32x1xbf16>
    %34 = arith.truncf %32 : vector<8x32xf32> to vector<8x32xbf16>
    %cst_20 = arith.constant dense<0.000000e+00> : vector<8x1xf32>
    %35 = tpu.matmul %34, %33, %cst_20 {dimension_numbers = #tpu.dot_dimension_numbers<[1], [0], [0], [1], [0, 0, 1, 1], [], []>} : vector<8x32xbf16>, vector<32x1xbf16>, vector<8x1xf32> -> vector<8x1xf32>
    %c0_21 = arith.constant 0 : index
    %c0_22 = arith.constant 0 : index
    %36 = vector.load %arg8[%c0_21, %c0_22] : memref<16x1xbf16, #tpu.memory_space<vmem>>, vector<16x1xbf16>
    %37 = arith.truncf %0 : vector<8x16xf32> to vector<8x16xbf16>
    %cst_23 = arith.constant dense<0.000000e+00> : vector<8x1xf32>
    %38 = tpu.matmul %37, %36, %cst_23 {dimension_numbers = #tpu.dot_dimension_numbers<[1], [0], [0], [1], [0, 0, 1, 1], [], []>} : vector<8x16xbf16>, vector<16x1xbf16>, vector<8x1xf32> -> vector<8x1xf32>
    %39 = arith.addf %35, %38 : vector<8x1xf32>
    %c0_24 = arith.constant 0 : index
    %c0_25 = arith.constant 0 : index
    %40 = vector.load %arg9[%c0_24, %c0_25] : memref<1x1xf32, #tpu.memory_space<vmem>>, vector<1x1xf32>
    %41 = vector.broadcast %40 : vector<1x1xf32> to vector<8x1xf32>
    %42 = arith.addf %39, %41 : vector<8x1xf32>
    %c0_26 = arith.constant 0 : index
    %c0_27 = arith.constant 0 : index
    %43 = vector.load %arg11[%c0_26, %c0_27] : memref<8x1xf32, #tpu.memory_space<vmem>>, vector<8x1xf32>
    tpu.vector_store %arg11[%c0_26, %c0_27], %42 {strides = array<i32>} : memref<8x1xf32, #tpu.memory_space<vmem>>, vector<8x1xf32>,
    return
  }
  func.func @transform_0(%arg0: i32) -> (i32, i32) {
    %c0_i32 = arith.constant 0 : i32
    %c0_i32_0 = arith.constant 0 : i32
    return %arg0, %c0_i32 : i32, i32
  }
  func.func @transform_1(%arg0: i32) -> (i32, i32) {
    %c0_i32 = arith.constant 0 : i32
    %c0_i32_0 = arith.constant 0 : i32
    return %arg0, %c0_i32 : i32, i32
  }
  func.func @transform_2(%arg0: i32) -> (i32, i32) {
    %c0_i32 = arith.constant 0 : i32
    %c0_i32_0 = arith.constant 0 : i32
    %c0_i32_1 = arith.constant 0 : i32
    return %c0_i32, %c0_i32_0 : i32, i32
  }
  func.func @transform_3(%arg0: i32) -> (i32, i32) {
    %c0_i32 = arith.constant 0 : i32
    %c0_i32_0 = arith.constant 0 : i32
    %c0_i32_1 = arith.constant 0 : i32
    return %c0_i32, %c0_i32_0 : i32, i32
  }
  func.func @transform_4(%arg0: i32) -> (i32, i32) {
    %c0_i32 = arith.constant 0 : i32
    %c0_i32_0 = arith.constant 0 : i32
    %c0_i32_1 = arith.constant 0 : i32
    return %c0_i32, %c0_i32_0 : i32, i32
  }
  func.func @transform_5(%arg0: i32) -> (i32, i32) {
    %c0_i32 = arith.constant 0 : i32
    %c0_i32_0 = arith.constant 0 : i32
    %c0_i32_1 = arith.constant 0 : i32
    return %c0_i32, %c0_i32_0 : i32, i32
  }
  func.func @transform_6(%arg0: i32) -> (i32, i32) {
    %c0_i32 = arith.constant 0 : i32
    %c0_i32_0 = arith.constant 0 : i32
    %c0_i32_1 = arith.constant 0 : i32
    return %c0_i32, %c0_i32_0 : i32, i32
  }
  func.func @transform_7(%arg0: i32) -> (i32, i32) {
    %c0_i32 = arith.constant 0 : i32
    %c0_i32_0 = arith.constant 0 : i32
    %c0_i32_1 = arith.constant 0 : i32
    return %c0_i32, %c0_i32_0 : i32, i32
  }
  func.func @transform_8(%arg0: i32) -> (i32, i32) {
    %c0_i32 = arith.constant 0 : i32
    %c0_i32_0 = arith.constant 0 : i32
    %c0_i32_1 = arith.constant 0 : i32
    return %c0_i32, %c0_i32_0 : i32, i32
  }
  func.func @transform_9(%arg0: i32) -> (i32, i32) {
    %c0_i32 = arith.constant 0 : i32
    %c0_i32_0 = arith.constant 0 : i32
    return %arg0, %c0_i32 : i32, i32
  }
  func.func @transform_10(%arg0: i32) -> (i32, i32) {
    %c0_i32 = arith.constant 0 : i32
    %c0_i32_0 = arith.constant 0 : i32
    return %arg0, %c0_i32 : i32, i32
  }
}

</mosaic_0001>

<bundles_post_ra>
// kernel: rosettafold_forward.10
= control target key start
LH: loop header
LB: loop body
LE: loop exit
PB: predicated region body
PF: predicated region fallthrough
CT: control target
= control target key end

     0   :  { %s803_s24 = smov 0   ;;  %s1006_s0 = inlined_call_operand.vmem [shape: f32[256,32], index: 0, kind: input, shape index: {}]   ;;  %s1007_s1 = inlined_call_operand.vmem [shape: f32[256,32], index: 1, kind: input, shape index: {}]   ;;  %s1008_s2 = inlined_call_operand.vmem [shape: bf16[32,74], index: 2, kind: input, shape index: {}]   ;;  %s1009_s3 = inlined_call_operand.vmem [shape: f32[1,74], index: 3, kind: input, shape index: {}]   ;;  %s1010_s4 = inlined_call_operand.vmem [shape: bf16[32,120], index: 4, kind: input, shape index: {}]   ;;  %s1011_s5 = inlined_call_operand.vmem [shape: f32[1,120], index: 5, kind: input, shape index: {}]   ;;  %s1012_s6 = inlined_call_operand.vmem [shape: f32[256,74], index: 6, kind: output, shape index: {0}]   ;;  %s1013_s7 = inlined_call_operand.vmem [shape: f32[256,120], index: 7, kind: output, shape index: {1}]  }
   0x1 LB: > { %s690_s25 = sadd.s32 4294967295, %s761_s24   ;;  %p694_p0 = scmp.ge.s32.totalorder %s761_s24, 1  ;;  %s761_s24 = sphi %s803_s24, %s18_s24  }
   0x2   : > { %p252_p1 = scmp.lt.s32.totalorder %s761_s24, 3 }
   0x4   : > { %p253_p2 = pnand %p694_p0, %p252_p1 }
   0x5   : > { %s695_s30 = sshll.u32 (!%p253_p2), %s690_s25, 4 }
   0x6   : > { %256 = sbr.rel (%p253_p2) target bundleno = 211 (0xd3), region = 44  ;;  %p295_p3 = scmp.lt.s32.totalorder (!%p253_p2), %s695_s30, 31 }
   0xb   : > { %v738_v0 = vld [vmem:[%s1008_s2 + $0x8] sm:$0xff]  ;;  %v737_v2 = vld [vmem:[%s1008_s2] sm:$0xff]  ;;  %s1015_s30 = smov (!%p295_p3, %s695_s30), 31  ;;  %vm363_vm0 = vcmask 261120   ;;  %vm437_vm1 = vcmask 605184   ;;  %vm571_vm2 = vcmask 982016  }
   0xc   : > { %v740_v1 = vld [vmem:[%s1010_s4 + $0x8] sm:$0xff]  ;;  %394 = vmatpush.bf16.msra.mxu0 %v738_v0  ;;  %741 = vmatpush.bf16.msra.mxu2 %v738_v0  ;;  %v739_v3 = vld [vmem:[%s1010_s4] sm:$0xff]  ;;  %s823_s12 = sshll.u32 %s1015_s30, 3 }
   0xd   : > { %528 = vmatpush.bf16.msra.mxu1 %v740_v1  ;;  %743 = vmatpush.bf16.msra.mxu3 %v740_v1  ;;  %s829_s15 = scalar_lea.vmem %s1007_s1, %s823_s12  ;;  %s835_s18 = scalar_lea.vmem %s1006_s0, %s823_s12  ;;  %v888_v52 = vld [vmem:[%s1009_s3] ss:$0 sm:$0xff] }
   0xe   : > { %v319_v4 = vld [vmem:[%s829_s15] sm:$0xff]  ;;  %v320_v5 = vld [vmem:[%s829_s15 + $0x8] sm:$0xff]  ;;  %v321_v16 = vld [vmem:[%s829_s15 + $0x10] sm:$0xff]  ;;  %s899_s26 = scalar_lea.vmem %s1012_s6, %s823_s12  ;;  %s906_s29 = scalar_lea.vmem %s1013_s7, %s823_s12 }
   0xf   : > { %v327_v6 = vld [vmem:[%s829_s15 + $0x40] sm:$0xff]  ;;  %v339_v7 = vpack.c.bf16 %v320_v5, %v319_v4  ;;  %v328_v8 = vld [vmem:[%s829_s15 + $0x48] sm:$0xff]  ;;  %v322_v17 = vld [vmem:[%s829_s15 + $0x18] sm:$0xff] }
  0x10   : > { %395 = vmatpush.bf16.msra.mxu0 %v737_v2  ;;  %742 = vmatpush.bf16.msra.mxu2 %v737_v2  ;;  %v454_v9 = vld [vmem:[%s835_s18] sm:$0xff]  ;;  %v455_v10 = vld [vmem:[%s835_s18 + $0x8] sm:$0xff]  ;;  %v343_v11 = vpack.c.bf16 %v328_v8, %v327_v6  ;;  %v329_v18 = vld [vmem:[%s829_s15 + $0x50] sm:$0xff]  ;;  %v340_v24 = vpack.c.bf16 %v322_v17, %v321_v16 }
  0x11   : > { %529 = vmatpush.bf16.msra.mxu1 %v739_v3  ;;  %744 = vmatpush.bf16.msra.mxu3 %v739_v3  ;;  %v474_v12 = vpack.c.bf16 %v455_v10, %v454_v9  ;;  %v462_v13 = vld [vmem:[%s835_s18 + $0x40] sm:$0xff]  ;;  %v463_v14 = vld [vmem:[%s835_s18 + $0x48] sm:$0xff]  ;;  %v330_v19 = vld [vmem:[%s829_s15 + $0x58] sm:$0xff] }
  0x12   : > { %v478_v15 = vpack.c.bf16 %v463_v14, %v462_v13  ;;  %v456_v20 = vld [vmem:[%s835_s18 + $0x10] sm:$0xff]  ;;  %v457_v21 = vld [vmem:[%s835_s18 + $0x18] sm:$0xff]  ;;  %v344_v25 = vpack.c.bf16 %v330_v19, %v329_v18  ;;  %v323_v28 = vld [vmem:[%s829_s15 + $0x20] sm:$0xff] }
  0x13   : > { %711 = vmatmul.msk.bf16.vlgmr.msra.gmra.mxu0 %vm363_vm0, %v339_v7  ;;  %715 = vmatmul.msk.bf16.vlgmr.msra.gmra.mxu2 %vm363_vm0, %v343_v11  ;;  %v464_v22 = vld [vmem:[%s835_s18 + $0x50] sm:$0xff]  ;;  %v465_v23 = vld [vmem:[%s835_s18 + $0x58] sm:$0xff]  ;;  %v475_v26 = vpack.c.bf16 %v457_v21, %v456_v20  ;;  %v324_v29 = vld [vmem:[%s829_s15 + $0x28] sm:$0xff] }
  0x14   : > { %727 = vmatmul.msk.bf16.vlgmr.msra.gmra.mxu1 %vm363_vm0, %v474_v12  ;;  %731 = vmatmul.msk.bf16.vlgmr.msra.gmra.mxu3 %vm363_vm0, %v478_v15  ;;  %v479_v27 = vpack.c.bf16 %v465_v23, %v464_v22  ;;  %v331_v30 = vld [vmem:[%s829_s15 + $0x60] sm:$0xff]  ;;  %v332_v31 = vld [vmem:[%s829_s15 + $0x68] sm:$0xff]  ;;  %v341_v36 = vpack.c.bf16 %v324_v29, %v323_v28  ;;  %v325_v40 = vld [vmem:[%s829_s15 + $0x30] sm:$0xff] }
  0x15   : > { %v458_v32 = vld [vmem:[%s835_s18 + $0x20] sm:$0xff]  ;;  %v459_v33 = vld [vmem:[%s835_s18 + $0x28] sm:$0xff]  ;;  %v345_v37 = vpack.c.bf16 %v332_v31, %v331_v30  ;;  %v326_v41 = vld [vmem:[%s829_s15 + $0x38] sm:$0xff] }
  0x16   : > { %v466_v34 = vld [vmem:[%s835_s18 + $0x60] sm:$0xff]  ;;  %v467_v35 = vld [vmem:[%s835_s18 + $0x68] sm:$0xff]  ;;  %v476_v38 = vpack.c.bf16 %v459_v33, %v458_v32  ;;  %v333_v42 = vld [vmem:[%s829_s15 + $0x70] sm:$0xff]  ;;  %v342_v48 = vpack.c.bf16 %v326_v41, %v325_v40 }
  0x17   : > { %v480_v39 = vpack.c.bf16 %v467_v35, %v466_v34  ;;  %v334_v43 = vld [vmem:[%s829_s15 + $0x78] sm:$0xff]  ;;  %v460_v44 = vld [vmem:[%s835_s18 + $0x30] sm:$0xff]  ;;  %v893_v53 = vld [vmem:[%s1011_s5] ss:$0 sm:$0xff] }
  0x18   : > { %v461_v45 = vld [vmem:[%s835_s18 + $0x38] sm:$0xff]  ;;  %v468_v46 = vld [vmem:[%s835_s18 + $0x70] sm:$0xff]  ;;  %v346_v49 = vpack.c.bf16 %v334_v43, %v333_v42 }
  0x19   : > { %v469_v47 = vld [vmem:[%s835_s18 + $0x78] sm:$0xff]  ;;  %v477_v50 = vpack.c.bf16 %v461_v45, %v460_v44 }
  0x1a   : > { %v481_v51 = vpack.c.bf16 %v469_v47, %v468_v46 }
  0x23   : > { %712 = vmatmul.msk.bf16.gmra.mxu0 %vm363_vm0, %v340_v24  ;;  %716 = vmatmul.msk.bf16.gmra.mxu2 %vm363_vm0, %v344_v25 }
  0x24   : > { %728 = vmatmul.msk.bf16.gmra.mxu1 %vm363_vm0, %v475_v26  ;;  %732 = vmatmul.msk.bf16.gmra.mxu3 %vm363_vm0, %v479_v27 }
  0x33   : > { %713 = vmatmul.msk.bf16.gmra.mxu0 %vm363_vm0, %v341_v36  ;;  %717 = vmatmul.msk.bf16.gmra.mxu2 %vm363_vm0, %v345_v37 }
  0x34   : > { %729 = vmatmul.msk.bf16.gmra.mxu1 %vm363_vm0, %v476_v38  ;;  %733 = vmatmul.msk.bf16.gmra.mxu3 %vm363_vm0, %v480_v39 }
  0x43   : > { %714 = vmatmul.msk.bf16.gmra.mxu0 %vm363_vm0, %v342_v48  ;;  %718 = vmatmul.msk.bf16.gmra.mxu2 %vm363_vm0, %v346_v49 }
  0x44   : > { %730 = vmatmul.msk.bf16.gmra.mxu1 %vm363_vm0, %v477_v50  ;;  %734 = vmatmul.msk.bf16.gmra.mxu3 %vm363_vm0, %v481_v51 }
  0x90   : > { %v397_v54 = vpop.f32.mrf.mxu0 }
  0x91   : > { %v398_v55 = vadd.f32 %v888_v52, %v397_v54  ;;  %v531_v56 = vpop.f32.mrf.mxu1 }
  0x92   : > { %v532_v57 = vadd.f32 %v893_v53, %v531_v56 }
  0x93   : > { %438 = vst.msk [vmem:[%s899_s26] sm:$0xff] %vm437_vm1, %v398_v55 }
  0x94   : > { %572 = vst.msk [vmem:[%s906_s29] sm:$0xff] %vm571_vm2, %v532_v57 }
  0x96   : > { %v417_v58 = vpop.f32.mrf.mxu2 }
  0x97   : > { %v418_v59 = vadd.f32 %v888_v52, %v417_v58  ;;  %v551_v60 = vpop.f32.mrf.mxu3 }
  0x98   : > { %v399_v61 = vpop.f32.mrf.mxu0  ;;  %v552_v62 = vadd.f32 %v893_v53, %v551_v60 }
  0x99   : > { %v400_v63 = vadd.f32 %v888_v52, %v399_v61  ;;  %v533_v0 = vpop.f32.mrf.mxu1  ;;  %446 = vst.msk [vmem:[%s899_s26 + $0x40] sm:$0xff] %vm437_vm1, %v418_v59 }
  0x9a   : > { %v534_v1 = vadd.f32 %v893_v53, %v533_v0  ;;  %580 = vst.msk [vmem:[%s906_s29 + $0x40] sm:$0xff] %vm571_vm2, %v552_v62 }
  0x9b   : > { %439 = vst.msk [vmem:[%s899_s26 + $0x8] sm:$0xff] %vm437_vm1, %v400_v63 }
  0x9c   : > { %573 = vst.msk [vmem:[%s906_s29 + $0x8] sm:$0xff] %vm571_vm2, %v534_v1 }
  0x9e   : > { %v419_v2 = vpop.f32.mrf.mxu2 }
  0x9f   : > { %v420_v3 = vadd.f32 %v888_v52, %v419_v2  ;;  %v553_v4 = vpop.f32.mrf.mxu3 }
  0xa0   : > { %v402_v5 = vpop.f32.mrf.mxu0  ;;  %v554_v6 = vadd.f32 %v893_v53, %v553_v4 }
  0xa1   : > { %v403_v7 = vadd.f32 %v888_v52, %v402_v5  ;;  %v536_v8 = vpop.f32.mrf.mxu1  ;;  %447 = vst.msk [vmem:[%s899_s26 + $0x48] sm:$0xff] %vm437_vm1, %v420_v3 }
  0xa2   : > { %v537_v9 = vadd.f32 %v893_v53, %v536_v8  ;;  %581 = vst.msk [vmem:[%s906_s29 + $0x48] sm:$0xff] %vm571_vm2, %v554_v6 }
  0xa3   : > { %440 = vst.msk [vmem:[%s899_s26 + $0x10] sm:$0xff] %vm437_vm1, %v403_v7 }
  0xa4   : > { %574 = vst.msk [vmem:[%s906_s29 + $0x10] sm:$0xff] %vm571_vm2, %v537_v9 }
  0xa6   : > { %v422_v10 = vpop.f32.mrf.mxu2 }
  0xa7   : > { %v423_v11 = vadd.f32 %v888_v52, %v422_v10  ;;  %v556_v12 = vpop.f32.mrf.mxu3 }
  0xa8   : > { %v404_v13 = vpop.f32.mrf.mxu0  ;;  %v557_v14 = vadd.f32 %v893_v53, %v556_v12 }
  0xa9   : > { %v405_v15 = vadd.f32 %v888_v52, %v404_v13  ;;  %v538_v16 = vpop.f32.mrf.mxu1  ;;  %448 = vst.msk [vmem:[%s899_s26 + $0x50] sm:$0xff] %vm437_vm1, %v423_v11 }
  0xaa   : > { %v539_v17 = vadd.f32 %v893_v53, %v538_v16  ;;  %582 = vst.msk [vmem:[%s906_s29 + $0x50] sm:$0xff] %vm571_vm2, %v557_v14 }
  0xab   : > { %441 = vst.msk [vmem:[%s899_s26 + $0x18] sm:$0xff] %vm437_vm1, %v405_v15 }
  0xac   : > { %575 = vst.msk [vmem:[%s906_s29 + $0x18] sm:$0xff] %vm571_vm2, %v539_v17 }
  0xae   : > { %v424_v18 = vpop.f32.mrf.mxu2 }
  0xaf   : > { %v425_v19 = vadd.f32 %v888_v52, %v424_v18  ;;  %v558_v20 = vpop.f32.mrf.mxu3 }
  0xb0   : > { %v407_v21 = vpop.f32.mrf.mxu0  ;;  %v559_v22 = vadd.f32 %v893_v53, %v558_v20 }
  0xb1   : > { %v408_v23 = vadd.f32 %v888_v52, %v407_v21  ;;  %v541_v24 = vpop.f32.mrf.mxu1  ;;  %449 = vst.msk [vmem:[%s899_s26 + $0x58] sm:$0xff] %vm437_vm1, %v425_v19 }
  0xb2   : > { %v542_v25 = vadd.f32 %v893_v53, %v541_v24  ;;  %583 = vst.msk [vmem:[%s906_s29 + $0x58] sm:$0xff] %vm571_vm2, %v559_v22 }
  0xb3   : > { %442 = vst.msk [vmem:[%s899_s26 + $0x20] sm:$0xff] %vm437_vm1, %v408_v23 }
  0xb4   : > { %576 = vst.msk [vmem:[%s906_s29 + $0x20] sm:$0xff] %vm571_vm2, %v542_v25 }
  0xb6   : > { %v427_v26 = vpop.f32.mrf.mxu2 }
  0xb7   : > { %v428_v27 = vadd.f32 %v888_v52, %v427_v26  ;;  %v561_v28 = vpop.f32.mrf.mxu3 }
  0xb8   : > { %v409_v29 = vpop.f32.mrf.mxu0  ;;  %v562_v30 = vadd.f32 %v893_v53, %v561_v28 }
  0xb9   : > { %v410_v31 = vadd.f32 %v888_v52, %v409_v29  ;;  %v543_v32 = vpop.f32.mrf.mxu1  ;;  %450 = vst.msk [vmem:[%s899_s26 + $0x60] sm:$0xff] %vm437_vm1, %v428_v27 }
  0xba   : > { %v544_v33 = vadd.f32 %v893_v53, %v543_v32  ;;  %584 = vst.msk [vmem:[%s906_s29 + $0x60] sm:$0xff] %vm571_vm2, %v562_v30 }
  0xbb   : > { %443 = vst.msk [vmem:[%s899_s26 + $0x28] sm:$0xff] %vm437_vm1, %v410_v31 }
  0xbc   : > { %577 = vst.msk [vmem:[%s906_s29 + $0x28] sm:$0xff] %vm571_vm2, %v544_v33 }
  0xbe   : > { %v429_v34 = vpop.f32.mrf.mxu2 }
  0xbf   : > { %v430_v35 = vadd.f32 %v888_v52, %v429_v34  ;;  %v563_v36 = vpop.f32.mrf.mxu3 }
  0xc0   : > { %v412_v37 = vpop.f32.mrf.mxu0  ;;  %v564_v38 = vadd.f32 %v893_v53, %v563_v36 }
  0xc1   : > { %v413_v39 = vadd.f32 %v888_v52, %v412_v37  ;;  %v546_v40 = vpop.f32.mrf.mxu1  ;;  %451 = vst.msk [vmem:[%s899_s26 + $0x68] sm:$0xff] %vm437_vm1, %v430_v35 }
  0xc2   : > { %v547_v41 = vadd.f32 %v893_v53, %v546_v40  ;;  %585 = vst.msk [vmem:[%s906_s29 + $0x68] sm:$0xff] %vm571_vm2, %v564_v38 }
  0xc3   : > { %444 = vst.msk [vmem:[%s899_s26 + $0x30] sm:$0xff] %vm437_vm1, %v413_v39 }
  0xc4   : > { %578 = vst.msk [vmem:[%s906_s29 + $0x30] sm:$0xff] %vm571_vm2, %v547_v41 }
  0xc6   : > { %v432_v42 = vpop.f32.mrf.mxu2 }
  0xc7   : > { %v433_v43 = vadd.f32 %v888_v52, %v432_v42  ;;  %v566_v44 = vpop.f32.mrf.mxu3 }
  0xc8   : > { %v414_v45 = vpop.f32.mrf.mxu0  ;;  %v567_v46 = vadd.f32 %v893_v53, %v566_v44 }
  0xc9   : > { %v415_v47 = vadd.f32 %v888_v52, %v414_v45  ;;  %v548_v48 = vpop.f32.mrf.mxu1  ;;  %452 = vst.msk [vmem:[%s899_s26 + $0x70] sm:$0xff] %vm437_vm1, %v433_v43 }
  0xca   : > { %v549_v49 = vadd.f32 %v893_v53, %v548_v48  ;;  %586 = vst.msk [vmem:[%s906_s29 + $0x70] sm:$0xff] %vm571_vm2, %v567_v46 }
  0xcb   : > { %445 = vst.msk [vmem:[%s899_s26 + $0x38] sm:$0xff] %vm437_vm1, %v415_v47 }
  0xcc   : > { %579 = vst.msk [vmem:[%s906_s29 + $0x38] sm:$0xff] %vm571_vm2, %v549_v49 }
  0xce   : > { %v434_v50 = vpop.f32.mrf.mxu2 }
  0xcf   : > { %v435_v51 = vadd.f32 %v888_v52, %v434_v50  ;;  %v568_v54 = vpop.f32.mrf.mxu3 }
  0xd0   : > { %v569_v55 = vadd.f32 %v893_v53, %v568_v54 }
  0xd1   : > { %453 = vst.msk [vmem:[%s899_s26 + $0x78] sm:$0xff] %vm437_vm1, %v435_v51 }
  0xd2   : > { %587 = vst.msk [vmem:[%s906_s29 + $0x78] sm:$0xff] %vm571_vm2, %v569_v55 }
  0xd3 PF: > { %s18_s24 = sadd.s32 1, %s761_s24  }
  0xd4   : > { %p15_p4 = scmp.ge.s32.totalorder %s18_s24, 4  }
  0xd6   :  { %17 = sbr.rel (!%p15_p4) target bundleno = 1 (0x1), region = 89 }

// kernel: rosettafold_forward.7
= control target key start
LH: loop header
LB: loop body
LE: loop exit
PB: predicated region body
PF: predicated region fallthrough
CT: control target
= control target key end

     0   :  { %s1391_s30 = smov 0   ;;  %s1774_s0 = inlined_call_operand.vmem [shape: f32[256,32], index: 0, kind: input, shape index: {}]   ;;  %s1775_s1 = inlined_call_operand.vmem [shape: f32[256,1], index: 1, kind: input, shape index: {}]   ;;  %s1776_s2 = inlined_call_operand.vmem [shape: f32[256,44], index: 2, kind: input, shape index: {}]   ;;  %s1777_s3 = inlined_call_operand.vmem [shape: f32[1,36], index: 3, kind: input, shape index: {}]   ;;  %s1778_s4 = inlined_call_operand.vmem [shape: bf16[36,32], index: 4, kind: input, shape index: {}]   ;;  %s1779_s5 = inlined_call_operand.vmem [shape: bf16[44,32], index: 5, kind: input, shape index: {}]   ;;  %s1780_s6 = inlined_call_operand.vmem [shape: f32[1,32], index: 6, kind: input, shape index: {}, may-alias: {6,8}]   ;;  %s1781_s7 = inlined_call_operand.vmem [shape: bf16[32,32], index: 7, kind: input, shape index: {}]   ;;  %s1782_s8 = inlined_call_operand.vmem [shape: f32[1,32], index: 8, kind: input, shape index: {}, may-alias: {6,8}]   ;;  %s1783_s9 = inlined_call_operand.vmem [shape: f32[256,32], index: 9, kind: output, shape index: {}]  }
   0x1 LB: > { %s1203_s10 = sadd.s32 4294967295, %s1338_s30   ;;  %p1207_p0 = scmp.ge.s32.totalorder %s1338_s30, 1  ;;  %s1338_s30 = sphi %s1391_s30, %s19_s30  }
   0x2   : > { %p310_p1 = scmp.lt.s32.totalorder %s1338_s30, 3 }
   0x4   : > { %p311_p2 = pnand %p1207_p0, %p310_p1 }
   0x5   : > { %s1208_s11 = sshll.u32 (!%p311_p2), %s1203_s10, 4 }
   0x6   : > { %314 = sbr.rel (%p311_p2) target bundleno = 704 (0x2c0), region = 56  ;;  %p357_p3 = scmp.lt.s32.totalorder (!%p311_p2), %s1208_s11, 31 }
   0xb   : > { %v1340_v0 = vmov 0   ;;  %s1785_s11 = smov (!%p357_p3, %s1208_s11), 31  ;;  %v1242_v17 = vld [vmem:[%s1779_s5 + $0x10] sm:$0xf]  ;;  %v1282_v18 = vld [vmem:[%s1779_s5 + $0x10] sm:$0x30] }
   0xc   : > { %1295 = vset.pattern.permute.xlu1 %v1340_v0  ;;  %1294 = vset.pattern.permute.xlu0 %v1340_v0  ;;  %s1399_s12 = sshll.u32 %s1785_s11, 3  ;;  %v1243_v19 = vor.u32 %v1282_v18, %v1242_v17  ;;  %vm771_vm0 = vcmask 1045504   ;;  %v581_v21 = vld [vmem:[%s1778_s4 + $0x10] sm:$0x3]  ;;  %v1281_v23 = vld [vmem:[%s1779_s5 + $0x8] sm:$0xff]  ;;  %vm630_vm1 = vcmask 1041408  }
   0xd   : > { %1296 = vset.pattern.permute.xlu2 %v1340_v0  ;;  %s1405_s15 = scalar_lea.vmem %s1775_s1, %s1399_s12  ;;  %v599_v22 = vunpack.c.l.b16 %v581_v21  ;;  %s1439_s26 = scalar_lea.vmem %s1776_s2, %s1399_s12  ;;  %v1280_v26 = vld [vmem:[%s1779_s5] sm:$0xff]  ;;  %v1279_v27 = vld [vmem:[%s1778_s4 + $0x8] sm:$0xff]  ;;  %vm746_vm2 = vcmask 359424   ;;  %vm605_vm3 = vcmask 293888   ;;  %vm888_vm4 = vcmask 261120  }
   0xe   : > { %v383_v1 = vld [vmem:[%s1405_s15 + $0x10] sm:$0xff]  ;;  %v381_v2 = vld [vmem:[%s1405_s15] sm:$0xff]  ;;  %v384_v4 = vld [vmem:[%s1405_s15 + $0x18] sm:$0xff]  ;;  %v773_v20 = vsel %vm771_vm0, %v1243_v19, 0  ;;  %s1513_s22 = scalar_lea.vmem %s1774_s0, %s1399_s12  ;;  %s1706_s29 = scalar_lea.vmem %s1783_s9, %s1399_s12 }
   0xf   : > { %410 = vperm.xlu1 %1295, %v383_v1   ;;  %400 = vperm.xlu0 %1294, %v381_v2   ;;  %v385_v3 = vld [vmem:[%s1405_s15 + $0x20] sm:$0xff]  ;;  %v382_v5 = vld [vmem:[%s1405_s15 + $0x8] sm:$0xff]  ;;  %v388_v7 = vld [vmem:[%s1405_s15 + $0x38] sm:$0xff]  ;;  %v602_v24 = vpack.c.b16 %v599_v22, %v599_v22 }
  0x10   : > { %420 = vperm.xlu2 %1296, %v385_v3   ;;  %v386_v6 = vld [vmem:[%s1405_s15 + $0x28] sm:$0xff]  ;;  %v387_v8 = vld [vmem:[%s1405_s15 + $0x30] sm:$0xff]  ;;  %v389_v9 = vld [vmem:[%s1405_s15 + $0x40] sm:$0xff]  ;;  %780 = vmatpush.bf16.msra.mxu1 %v773_v20 }
  0x11   : > { %v391_v10 = vld [vmem:[%s1405_s15 + $0x50] sm:$0xff]  ;;  %v390_v11 = vld [vmem:[%s1405_s15 + $0x48] sm:$0xff]  ;;  %v392_v12 = vld [vmem:[%s1405_s15 + $0x58] sm:$0xff]  ;;  %v632_v25 = vsel %vm630_vm1, %v602_v24, 0 }
  0x12   : > { %v394_v13 = vld [vmem:[%s1405_s15 + $0x68] sm:$0xff]  ;;  %v393_v14 = vld [vmem:[%s1405_s15 + $0x60] sm:$0xff]  ;;  %v395_v15 = vld [vmem:[%s1405_s15 + $0x70] sm:$0xff]  ;;  %639 = vmatpush.bf16.msra.mxu0 %v632_v25 }
  0x13   : > { %v396_v16 = vld [vmem:[%s1405_s15 + $0x78] sm:$0xff]  ;;  %v699_v28 = vld [vmem:[%s1439_s26] sm:$0xff]  ;;  %v700_v29 = vld [vmem:[%s1439_s26 + $0x8] sm:$0xff] }
  0x14   : > { %781 = vmatpush.bf16.msra.mxu1 %v1281_v23  ;;  %v721_v30 = vpack.c.bf16 %v700_v29, %v699_v28  ;;  %v1278_v31 = vld [vmem:[%s1778_s4] sm:$0xff]  ;;  %v701_v35 = vld [vmem:[%s1439_s26 + $0x10] sm:$0xff]  ;;  %v702_v36 = vld [vmem:[%s1439_s26 + $0x18] sm:$0xff] }
  0x15   : > { %v1456_v32 = vld [vmem:[%s1777_s3] ss:$0 sm:$0xff]  ;;  %v722_v37 = vpack.c.bf16 %v702_v36, %v701_v35  ;;  %v704_v51 = vld [vmem:[%s1439_s26 + $0x28] sm:$0xff]  ;;  %v705_v1 = vld [vmem:[%s1439_s26 + $0x30] sm:$0xff] }
  0x16   : > { %640 = vmatpush.bf16.msra.mxu0 %v1279_v27  ;;  %v703_v50 = vld [vmem:[%s1439_s26 + $0x20] sm:$0xff]  ;;  %v706_v2 = vld [vmem:[%s1439_s26 + $0x38] sm:$0xff]  ;;  %v708_v18 = vld [vmem:[%s1439_s26 + $0x48] sm:$0xff] }
  0x17   : > { %415 = vperm.xlu1 %1295, %v384_v4   ;;  %405 = vperm.xlu0 %1294, %v382_v5   ;;  %v723_v52 = vpack.c.bf16 %v704_v51, %v703_v50  ;;  %v724_v4 = vpack.c.bf16 %v706_v2, %v705_v1  ;;  %v707_v17 = vld [vmem:[%s1439_s26 + $0x40] sm:$0xff]  ;;  %v710_v35 = vld [vmem:[%s1439_s26 + $0x58] sm:$0xff]  ;;  %v712_v51 = vld [vmem:[%s1439_s26 + $0x68] sm:$0xff] }
  0x18   : > { %425 = vperm.xlu2 %1296, %v386_v6   ;;  %782 = vmatpush.bf16.msra.mxu1 %v1280_v26  ;;  %v725_v20 = vpack.c.bf16 %v708_v18, %v707_v17  ;;  %v711_v50 = vld [vmem:[%s1439_s26 + $0x60] sm:$0xff]  ;;  %v713_v2 = vld [vmem:[%s1439_s26 + $0x70] sm:$0xff] }
  0x1a   : > { %641 = vmatpush.bf16.msra.mxu0 %v1278_v31 }
  0x1b   : > { %1244 = vmatmul.msk.bf16.vlgmr.msra.gmra.mxu1 %vm746_vm2, %v721_v30 }
  0x1f   : > { %435 = vperm.xlu1 %1295, %v388_v7   ;;  %430 = vperm.xlu0 %1294, %v387_v8  }
  0x20   : > { %440 = vperm.xlu2 %1296, %v389_v9  }
  0x27   : > { %450 = vperm.xlu1 %1295, %v391_v10   ;;  %445 = vperm.xlu0 %1294, %v390_v11  }
  0x28   : > { %455 = vperm.xlu2 %1296, %v392_v12  }
  0x2b   : > { %1245 = vmatmul.msk.bf16.gmra.mxu1 %vm746_vm2, %v722_v37 }
  0x2f   : > { %465 = vperm.xlu1 %1295, %v394_v13   ;;  %460 = vperm.xlu0 %1294, %v393_v14  }
  0x30   : > { %470 = vperm.xlu2 %1296, %v395_v15  }
  0x37   : > { %475 = vperm.xlu0 %1294, %v396_v16  }
  0x3b   : > { %1246 = vmatmul.msk.bf16.gmra.mxu1 %vm746_vm2, %v723_v52 }
  0x4b   : > { %1247 = vmatmul.msk.bf16.gmra.mxu1 %vm746_vm2, %v724_v4 }
  0x5b   : > { %1248 = vmatmul.msk.bf16.gmra.mxu1 %vm746_vm2, %v725_v20 }
  0x6a   : > { %v421_v55 = vpop.permute.xlu2 %420 }
  0x6b   : > { %v485_v63 = vsub.f32 %v421_v55, %v1456_v32 }
  0x6d   : > { %v501_v5 = vmul.f32 %v485_v63, %v485_v63 }
  0x6f   : > { %v517_v9 = vmul.f32 -0.5, %v501_v5 }
  0x71   : > { %v537_v12 = vmul.f32 1.442695, %v517_v9 }
  0x72   : > { %v426_v0 = vpop.permute.xlu2 %425 }
  0x73   : > { %v486_v3 = vsub.f32 %v426_v0, %v1456_v32 }
  0x75   : > { %v502_v6 = vmul.f32 %v486_v3, %v486_v3  ;;  %v714_v3 = vld [vmem:[%s1439_s26 + $0x78] sm:$0xff] }
  0x76   : > { %v728_v5 = vpack.c.bf16 %v714_v3, %v713_v2  ;;  %v566_v2 = vld [vmem:[%s1513_s22 + $0x28] sm:$0xff] }
  0x77   : > { %v518_v10 = vmul.f32 -0.5, %v502_v6 }
  0x79   : > { %v539_v13 = vmul.f32 1.442695, %v518_v10 }
  0x7a   : > { %v441_v31 = vpop.permute.xlu2 %440 }
  0x81   : > { %v401_v33 = vpop.permute.xlu0 %400  ;;  %v411_v38 = vpop.permute.xlu1 %410 }
  0x82   : > { %v481_v34 = vsub.f32 %v401_v33, %v1456_v32  ;;  %v483_v46 = vsub.f32 %v411_v38, %v1456_v32  ;;  %v489_v33 = vsub.f32 %v441_v31, %v1456_v32 }
  0x84   : > { %v497_v39 = vmul.f32 %v481_v34, %v481_v34  ;;  %v499_v53 = vmul.f32 %v483_v46, %v483_v46  ;;  %v709_v34 = vld [vmem:[%s1439_s26 + $0x50] sm:$0xff]  ;;  %v505_v38 = vmul.f32 %v489_v33, %v489_v33  ;;  %v456_v46 = vpop.permute.xlu2 %455 }
  0x85   : > { %v726_v37 = vpack.c.bf16 %v710_v35, %v709_v34 }
  0x86   : > { %v513_v41 = vmul.f32 -0.5, %v497_v39  ;;  %v515_v57 = vmul.f32 -0.5, %v499_v53  ;;  %v727_v53 = vpack.c.bf16 %v712_v51, %v711_v50  ;;  %v563_v51 = vld [vmem:[%s1513_s22 + $0x10] sm:$0xff] }
  0x87   : > { %1249 = vmatmul.msk.bf16.gmra.mxu1 %vm746_vm2, %v726_v37  ;;  %v561_v37 = vld [vmem:[%s1513_s22] sm:$0xff] }
  0x88   : > { %v529_v44 = vmul.f32 1.442695, %v513_v41  ;;  %v533_v61 = vmul.f32 1.442695, %v515_v57 }
  0x89   : > { %v406_v40 = vpop.permute.xlu0 %405  ;;  %v416_v47 = vpop.permute.xlu1 %415 }
  0x8a   : > { %v482_v42 = vsub.f32 %v406_v40, %v1456_v32  ;;  %v484_v49 = vsub.f32 %v416_v47, %v1456_v32  ;;  %1300 = vpow2.f32 %v529_v44 }
  0x8c   : > { %v498_v43 = vmul.f32 %v482_v42, %v482_v42  ;;  %v500_v54 = vmul.f32 %v484_v49, %v484_v49  ;;  %v521_v42 = vmul.f32 -0.5, %v505_v38  ;;  %v492_v49 = vsub.f32 %v456_v46, %v1456_v32 }
  0x8e   : > { %v514_v45 = vmul.f32 -0.5, %v498_v43  ;;  %v516_v59 = vmul.f32 -0.5, %v500_v54  ;;  %v508_v54 = vmul.f32 %v492_v49, %v492_v49 }
  0x90   : > { %v531_v48 = vmul.f32 1.442695, %v514_v45  ;;  %v1301_v56 = vpop.eup %1300  ;;  %v535_v62 = vmul.f32 1.442695, %v516_v59  ;;  %v545_v45 = vmul.f32 1.442695, %v521_v42 }
  0x91   : > { %v436_v14 = vpop.permute.xlu1 %435  ;;  %v431_v15 = vpop.permute.xlu0 %430 }
  0x92   : > { %1302 = vpow2.f32 %v531_v48  ;;  %v488_v16 = vsub.f32 %v436_v14, %v1456_v32  ;;  %v487_v19 = vsub.f32 %v431_v15, %v1456_v32 }
  0x93   : > { %1304 = vpow2.f32 %v533_v61 }
  0x94   : > { %1306 = vpow2.f32 %v535_v62  ;;  %v504_v21 = vmul.f32 %v488_v16, %v488_v16  ;;  %v503_v22 = vmul.f32 %v487_v19, %v487_v19  ;;  %v471_v16 = vpop.permute.xlu2 %470 }
  0x95   : > { %1308 = vpow2.f32 %v537_v12  ;;  %v495_v18 = vsub.f32 %v471_v16, %v1456_v32 }
  0x96   : > { %1310 = vpow2.f32 %v539_v13  ;;  %v520_v25 = vmul.f32 -0.5, %v504_v21  ;;  %v519_v26 = vmul.f32 -0.5, %v503_v22 }
  0x97   : > { %1250 = vmatmul.msk.bf16.gmra.mxu1 %vm746_vm2, %v727_v53  ;;  %v511_v22 = vmul.f32 %v495_v18, %v495_v18  ;;  %v564_v53 = vld [vmem:[%s1513_s22 + $0x18] sm:$0xff] }
  0x98   : > { %v1303_v58 = vpop.eup %1302  ;;  %v543_v28 = vmul.f32 1.442695, %v520_v25  ;;  %v541_v29 = vmul.f32 1.442695, %v519_v26 }
  0x99   : > { %v582_v60 = vpack.c.bf16 %v1303_v58, %v1301_v56  ;;  %v1305_v7 = vpop.eup %1304  ;;  %v446_v30 = vpop.permute.xlu0 %445  ;;  %v524_v58 = vmul.f32 -0.5, %v508_v54  ;;  %v527_v25 = vmul.f32 -0.5, %v511_v22 }
  0x9a   : > { %v1307_v8 = vpop.eup %1306  ;;  %1312 = vpow2.f32 %v543_v28  ;;  %v490_v36 = vsub.f32 %v446_v30, %v1456_v32  ;;  %v451_v48 = vpop.permute.xlu1 %450 }
  0x9b   : > { %1224 = vmatmul.msk.bf16.vlgmr.msra.gmra.mxu0 %vm605_vm3, %v582_v60  ;;  %v583_v11 = vpack.c.bf16 %v1307_v8, %v1305_v7  ;;  %v1309_v23 = vpop.eup %1308  ;;  %1314 = vpow2.f32 %v541_v29  ;;  %v491_v52 = vsub.f32 %v451_v48, %v1456_v32  ;;  %v551_v61 = vmul.f32 1.442695, %v524_v58  ;;  %v1284_v29 = vld [vmem:[%s1781_s7 + $0x8] sm:$0xff] }
  0x9c   : > { %v1311_v24 = vpop.eup %1310  ;;  %v506_v39 = vmul.f32 %v490_v36, %v490_v36  ;;  %1316 = vpow2.f32 %v545_v45  ;;  %v557_v28 = vmul.f32 1.442695, %v527_v25  ;;  %919 = vmatpush.bf16.msra.mxu2 %v1284_v29  ;;  %1032 = vmatpush.bf16.msra.mxu3 %v1284_v29  ;;  %v569_v25 = vld [vmem:[%s1513_s22 + $0x40] sm:$0xff] }
  0x9d   : > { %v584_v27 = vpack.c.bf16 %v1311_v24, %v1309_v23  ;;  %v507_v55 = vmul.f32 %v491_v52, %v491_v52 }
  0x9e   : > { %v522_v43 = vmul.f32 -0.5, %v506_v39 }
  0x9f   : > { %v523_v59 = vmul.f32 -0.5, %v507_v55 }
  0xa0   : > { %v1313_v40 = vpop.eup %1312  ;;  %v547_v47 = vmul.f32 1.442695, %v522_v43  ;;  %v1520_v43 = vld [vmem:[%s1780_s6] ss:$0 sm:$0xff] }
  0xa1   : > { %v1315_v41 = vpop.eup %1314  ;;  %v549_v62 = vmul.f32 1.442695, %v523_v59  ;;  %v461_v0 = vpop.permute.xlu0 %460 }
  0xa2   : > { %v585_v44 = vpack.c.bf16 %v1313_v40, %v1315_v41  ;;  %1318 = vpow2.f32 %v547_v47  ;;  %v1317_v56 = vpop.eup %1316  ;;  %v466_v63 = vpop.permute.xlu1 %465  ;;  %v493_v4 = vsub.f32 %v461_v0, %v1456_v32  ;;  %v562_v40 = vld [vmem:[%s1513_s22 + $0x8] sm:$0xff]  ;;  %v565_v0 = vld [vmem:[%s1513_s22 + $0x20] sm:$0xff] }
  0xa3   : > { %1320 = vpow2.f32 %v551_v61  ;;  %v494_v1 = vsub.f32 %v466_v63, %v1456_v32 }
  0xa4   : > { %1322 = vpow2.f32 %v549_v62  ;;  %v509_v7 = vmul.f32 %v493_v4, %v493_v4 }
  0xa5   : > { %v510_v6 = vmul.f32 %v494_v1, %v494_v1 }
  0xa7   : > { %1251 = vmatmul.msk.bf16.gmra.mxu1 %vm746_vm2, %v728_v5  ;;  %v526_v10 = vmul.f32 -0.5, %v510_v6 }
  0xa8   : > { %v1319_v57 = vpop.eup %1318 }
  0xa9   : > { %v586_v60 = vpack.c.bf16 %v1319_v57, %v1317_v56  ;;  %v1321_v8 = vpop.eup %1320  ;;  %v555_v13 = vmul.f32 1.442695, %v526_v10  ;;  %v476_v15 = vpop.permute.xlu0 %475 }
  0xaa   : > { %v1323_v9 = vpop.eup %1322  ;;  %v496_v17 = vsub.f32 %v476_v15, %v1456_v32  ;;  %v1283_v32 = vld [vmem:[%s1781_s7] sm:$0xff]  ;;  %v568_v15 = vld [vmem:[%s1513_s22 + $0x38] sm:$0xff] }
  0xab   : > { %1225 = vmatmul.msk.bf16.gmra.mxu0 %vm605_vm3, %v583_v11  ;;  %v525_v11 = vmul.f32 -0.5, %v509_v7  ;;  %v587_v12 = vpack.c.bf16 %v1321_v8, %v1323_v9  ;;  %1324 = vpow2.f32 %v555_v13  ;;  %920 = vmatpush.bf16.msra.mxu2 %v1283_v32 }
  0xac   : > { %v512_v19 = vmul.f32 %v496_v17, %v496_v17  ;;  %1033 = vmatpush.bf16.msra.mxu3 %v1283_v32 }
  0xad   : > { %v553_v14 = vmul.f32 1.442695, %v525_v11 }
  0xae   : > { %v528_v23 = vmul.f32 -0.5, %v512_v19 }
  0xaf   : > { %1326 = vpow2.f32 %v553_v14 }
  0xb0   : > { %v559_v26 = vmul.f32 1.442695, %v528_v23 }
  0xb1   : > { %v1325_v20 = vpop.eup %1324 }
  0xb2   : > { %1328 = vpow2.f32 %v559_v26 }
  0xb3   : > { %1330 = vpow2.f32 %v557_v28 }
  0xb5   : > { %v1327_v21 = vpop.eup %1326 }
  0xb6   : > { %v588_v24 = vpack.c.bf16 %v1325_v20, %v1327_v21 }
  0xb8   : > { %v1329_v30 = vpop.eup %1328 }
  0xb9   : > { %v1331_v33 = vpop.eup %1330 }
  0xba   : > { %v589_v34 = vpack.c.bf16 %v1329_v30, %v1331_v33 }
  0xbb   : > { %1226 = vmatmul.msk.bf16.gmra.mxu0 %vm605_vm3, %v584_v27  ;;  %v784_v27 = vpop.f32.mrf.mxu1 }
  0xc3   : > { %v786_v31 = vpop.f32.mrf.mxu1 }
  0xcb   : > { %1227 = vmatmul.msk.bf16.gmra.mxu0 %vm605_vm3, %v585_v44  ;;  %v789_v35 = vpop.f32.mrf.mxu1 }
  0xd3   : > { %v791_v38 = vpop.f32.mrf.mxu1 }
  0xdb   : > { %1228 = vmatmul.msk.bf16.gmra.mxu0 %vm605_vm3, %v586_v60  ;;  %v794_v46 = vpop.f32.mrf.mxu1 }
  0xe3   : > { %v796_v54 = vpop.f32.mrf.mxu1 }
  0xeb   : > { %1229 = vmatmul.msk.bf16.gmra.mxu0 %vm605_vm3, %v587_v12  ;;  %v799_v63 = vpop.f32.mrf.mxu1  ;;  %v567_v12 = vld [vmem:[%s1513_s22 + $0x30] sm:$0xff] }
  0xf3   : > { %v801_v6 = vpop.f32.mrf.mxu1 }
  0xfb   : > { %1230 = vmatmul.msk.bf16.gmra.mxu0 %vm605_vm3, %v588_v24  ;;  %v804_v13 = vpop.f32.mrf.mxu1 }
 0x103   : > { %v806_v22 = vpop.f32.mrf.mxu1 }
 0x10b   : > { %1231 = vmatmul.msk.bf16.gmra.mxu0 %vm605_vm3, %v589_v34  ;;  %v809_v29 = vpop.f32.mrf.mxu1 }
 0x118   : > { %v643_v36 = vpop.f32.mrf.mxu0 }
 0x119   : > { %v683_v39 = vadd.f32 %v643_v36, %v561_v37  ;;  %v571_v37 = vld [vmem:[%s1513_s22 + $0x50] sm:$0xff] }
 0x11b   : > { %v824_v42 = vadd.f32 %v784_v27, %v683_v39  ;;  %v570_v27 = vld [vmem:[%s1513_s22 + $0x48] sm:$0xff] }
 0x11d   : > { %v1523_v47 = vadd.f32 %v1520_v43, %v824_v42 }
 0x120   : > { %v645_v41 = vpop.f32.mrf.mxu0 }
 0x121   : > { %v684_v44 = vadd.f32 %v645_v41, %v562_v40  ;;  %v572_v40 = vld [vmem:[%s1513_s22 + $0x58] sm:$0xff] }
 0x123   : > { %v825_v45 = vadd.f32 %v786_v31, %v684_v44 }
 0x125   : > { %v1526_v48 = vadd.f32 %v1520_v43, %v825_v45 }
 0x127   : > { %v864_v49 = vpack.c.bf16 %v1526_v48, %v1523_v47 }
 0x128   : > { %v648_v50 = vpop.f32.mrf.mxu0 }
 0x129   : > { %1260 = vmatmul.msk.bf16.vlgmr.msra.gmra.mxu2 %vm888_vm4, %v864_v49  ;;  %v685_v52 = vadd.f32 %v648_v50, %v563_v51 }
 0x12b   : > { %v826_v56 = vadd.f32 %v789_v35, %v685_v52 }
 0x12d   : > { %v1534_v59 = vadd.f32 %v1520_v43, %v826_v56  ;;  %v574_v56 = vld [vmem:[%s1513_s22 + $0x68] sm:$0xff] }
 0x130   : > { %v650_v55 = vpop.f32.mrf.mxu0 }
 0x131   : > { %v686_v57 = vadd.f32 %v650_v55, %v564_v53  ;;  %v573_v53 = vld [vmem:[%s1513_s22 + $0x60] sm:$0xff] }
 0x133   : > { %v827_v58 = vadd.f32 %v791_v38, %v686_v57  ;;  %v811_v38 = vpop.f32.mrf.mxu1 }
 0x135   : > { %v1537_v60 = vadd.f32 %v1520_v43, %v827_v58 }
 0x137   : > { %v865_v61 = vpack.c.bf16 %v1537_v60, %v1534_v59 }
 0x138   : > { %v653_v62 = vpop.f32.mrf.mxu0 }
 0x139   : > { %1261 = vmatmul.msk.bf16.gmra.mxu2 %vm888_vm4, %v865_v61  ;;  %v687_v1 = vadd.f32 %v653_v62, %v565_v0 }
 0x13b   : > { %v828_v4 = vadd.f32 %v794_v46, %v687_v1  ;;  %v814_v46 = vpop.f32.mrf.mxu1 }
 0x13d   : > { %v1545_v8 = vadd.f32 %v1520_v43, %v828_v4  ;;  %v575_v4 = vld [vmem:[%s1513_s22 + $0x70] sm:$0xff] }
 0x140   : > { %v655_v3 = vpop.f32.mrf.mxu0 }
 0x141   : > { %v688_v5 = vadd.f32 %v655_v3, %v566_v2 }
 0x143   : > { %v829_v7 = vadd.f32 %v796_v54, %v688_v5  ;;  %v816_v55 = vpop.f32.mrf.mxu1 }
 0x145   : > { %v1548_v9 = vadd.f32 %v1520_v43, %v829_v7 }
 0x147   : > { %v866_v10 = vpack.c.bf16 %v1548_v9, %v1545_v8 }
 0x148   : > { %v658_v11 = vpop.f32.mrf.mxu0 }
 0x149   : > { %1262 = vmatmul.msk.bf16.gmra.mxu2 %vm888_vm4, %v866_v10  ;;  %v689_v14 = vadd.f32 %v658_v11, %v567_v12 }
 0x14b   : > { %v830_v17 = vadd.f32 %v799_v63, %v689_v14  ;;  %v819_v2 = vpop.f32.mrf.mxu1 }
 0x14d   : > { %v1556_v20 = vadd.f32 %v1520_v43, %v830_v17 }
 0x150   : > { %v660_v16 = vpop.f32.mrf.mxu0 }
 0x151   : > { %v690_v18 = vadd.f32 %v660_v16, %v568_v15 }
 0x153   : > { %v831_v19 = vadd.f32 %v801_v6, %v690_v18  ;;  %v576_v6 = vld [vmem:[%s1513_s22 + $0x78] sm:$0xff]  ;;  %v821_v12 = vpop.f32.mrf.mxu1  ;;  %v1611_v18 = vld [vmem:[%s1782_s8] ss:$0 sm:$0xff] }
 0x155   : > { %v1559_v21 = vadd.f32 %v1520_v43, %v831_v19 }
 0x157   : > { %v867_v23 = vpack.c.bf16 %v1559_v21, %v1556_v20 }
 0x158   : > { %v663_v24 = vpop.f32.mrf.mxu0 }
 0x159   : > { %1263 = vmatmul.msk.bf16.gmra.mxu2 %vm888_vm4, %v867_v23  ;;  %v691_v26 = vadd.f32 %v663_v24, %v569_v25 }
 0x15b   : > { %v832_v32 = vadd.f32 %v804_v13, %v691_v26 }
 0x15d   : > { %v1567_v33 = vadd.f32 %v1520_v43, %v832_v32 }
 0x160   : > { %v665_v28 = vpop.f32.mrf.mxu0 }
 0x161   : > { %v692_v30 = vadd.f32 %v665_v28, %v570_v27 }
 0x163   : > { %v833_v31 = vadd.f32 %v806_v22, %v692_v30 }
 0x165   : > { %v1570_v34 = vadd.f32 %v1520_v43, %v833_v31 }
 0x167   : > { %v868_v35 = vpack.c.bf16 %v1570_v34, %v1567_v33 }
 0x168   : > { %v668_v36 = vpop.f32.mrf.mxu0 }
 0x169   : > { %1264 = vmatmul.msk.bf16.gmra.mxu2 %vm888_vm4, %v868_v35  ;;  %v693_v39 = vadd.f32 %v668_v36, %v571_v37 }
 0x16b   : > { %v834_v42 = vadd.f32 %v809_v29, %v693_v39 }
 0x16d   : > { %v1578_v49 = vadd.f32 %v1520_v43, %v834_v42 }
 0x170   : > { %v670_v41 = vpop.f32.mrf.mxu0 }
 0x171   : > { %v694_v44 = vadd.f32 %v670_v41, %v572_v40 }
 0x173   : > { %v835_v45 = vadd.f32 %v811_v38, %v694_v44 }
 0x175   : > { %v1581_v50 = vadd.f32 %v1520_v43, %v835_v45 }
 0x177   : > { %v869_v51 = vpack.c.bf16 %v1581_v50, %v1578_v49 }
 0x178   : > { %v673_v52 = vpop.f32.mrf.mxu0 }
 0x179   : > { %1265 = vmatmul.msk.bf16.gmra.mxu2 %vm888_vm4, %v869_v51  ;;  %v695_v54 = vadd.f32 %v673_v52, %v573_v53 }
 0x17b   : > { %v836_v58 = vadd.f32 %v814_v46, %v695_v54 }
 0x17d   : > { %v1589_v63 = vadd.f32 %v1520_v43, %v836_v58 }
 0x180   : > { %v675_v57 = vpop.f32.mrf.mxu0 }
 0x181   : > { %v696_v61 = vadd.f32 %v675_v57, %v574_v56 }
 0x183   : > { %v837_v62 = vadd.f32 %v816_v55, %v696_v61 }
 0x185   : > { %v1592_v0 = vadd.f32 %v1520_v43, %v837_v62 }
 0x187   : > { %v870_v1 = vpack.c.bf16 %v1592_v0, %v1589_v63 }
 0x188   : > { %v678_v3 = vpop.f32.mrf.mxu0 }
 0x189   : > { %1266 = vmatmul.msk.bf16.gmra.mxu2 %vm888_vm4, %v870_v1  ;;  %v697_v5 = vadd.f32 %v678_v3, %v575_v4 }
 0x18b   : > { %v838_v10 = vadd.f32 %v819_v2, %v697_v5 }
 0x18d   : > { %v1600_v14 = vadd.f32 %v1520_v43, %v838_v10 }
 0x190   : > { %v680_v7 = vpop.f32.mrf.mxu0 }
 0x191   : > { %v698_v11 = vadd.f32 %v680_v7, %v576_v6 }
 0x193   : > { %v839_v13 = vadd.f32 %v821_v12, %v698_v11 }
 0x195   : > { %v1603_v15 = vadd.f32 %v1520_v43, %v839_v13 }
 0x197   : > { %v871_v16 = vpack.c.bf16 %v1603_v15, %v1600_v14 }
 0x199   : > { %1267 = vmatmul.msk.bf16.gmra.mxu2 %vm888_vm4, %v871_v16 }
 0x1ac   : > { %v922_v17 = vpop.f32.mrf.mxu2 }
 0x1ad   : > { %v923_v19 = vadd.f32 %v1611_v18, %v922_v17 }
 0x1af   : > { %v962_v23 = vmax.f32 %v923_v19, 0.0 }
 0x1b1   : > { %v1616_v43 = vadd.f32 %v962_v23, %v1523_v47 }
 0x1b4   : > { %v924_v22 = vpop.f32.mrf.mxu2 }
 0x1b5   : > { %v925_v24 = vadd.f32 %v1611_v18, %v924_v22 }
 0x1b7   : > { %v963_v25 = vmax.f32 %v925_v24, 0.0 }
 0x1b9   : > { %v1619_v26 = vadd.f32 %v963_v25, %v1526_v48 }
 0x1bb   : > { %v994_v27 = vpack.c.bf16 %v1619_v26, %v1616_v43 }
 0x1bc   : > { %v927_v28 = vpop.f32.mrf.mxu2 }
 0x1bd   : > { %1268 = vmatmul.msk.bf16.vlgmr.msra.gmra.mxu3 %vm888_vm4, %v994_v27  ;;  %v928_v29 = vadd.f32 %v1611_v18, %v927_v28 }
 0x1bf   : > { %v964_v30 = vmax.f32 %v928_v29, 0.0 }
 0x1c1   : > { %v1627_v36 = vadd.f32 %v964_v30, %v1534_v59 }
 0x1c4   : > { %v929_v32 = vpop.f32.mrf.mxu2 }
 0x1c5   : > { %v930_v31 = vadd.f32 %v1611_v18, %v929_v32 }
 0x1c7   : > { %v965_v35 = vmax.f32 %v930_v31, 0.0 }
 0x1c9   : > { %v1630_v47 = vadd.f32 %v965_v35, %v1537_v60 }
 0x1cb   : > { %v995_v48 = vpack.c.bf16 %v1630_v47, %v1627_v36 }
 0x1cc   : > { %v932_v37 = vpop.f32.mrf.mxu2 }
 0x1cd   : > { %1269 = vmatmul.msk.bf16.gmra.mxu3 %vm888_vm4, %v995_v48  ;;  %v933_v38 = vadd.f32 %v1611_v18, %v932_v37 }
 0x1cf   : > { %v966_v40 = vmax.f32 %v933_v38, 0.0 }
 0x1d1   : > { %v1638_v44 = vadd.f32 %v966_v40, %v1545_v8 }
 0x1d4   : > { %v934_v39 = vpop.f32.mrf.mxu2 }
 0x1d5   : > { %v935_v41 = vadd.f32 %v1611_v18, %v934_v39 }
 0x1d7   : > { %v967_v42 = vmax.f32 %v935_v41, 0.0 }
 0x1d9   : > { %v1641_v59 = vadd.f32 %v967_v42, %v1548_v9 }
 0x1db   : > { %v996_v60 = vpack.c.bf16 %v1641_v59, %v1638_v44 }
 0x1dc   : > { %v937_v45 = vpop.f32.mrf.mxu2 }
 0x1dd   : > { %1270 = vmatmul.msk.bf16.gmra.mxu3 %vm888_vm4, %v996_v60  ;;  %v938_v46 = vadd.f32 %v1611_v18, %v937_v45 }
 0x1df   : > { %v968_v52 = vmax.f32 %v938_v46, 0.0 }
 0x1e1   : > { %v1649_v55 = vadd.f32 %v968_v52, %v1556_v20 }
 0x1e4   : > { %v939_v51 = vpop.f32.mrf.mxu2 }
 0x1e5   : > { %v940_v53 = vadd.f32 %v1611_v18, %v939_v51 }
 0x1e7   : > { %v969_v54 = vmax.f32 %v940_v53, 0.0 }
 0x1e9   : > { %v1652_v8 = vadd.f32 %v969_v54, %v1559_v21 }
 0x1eb   : > { %v997_v9 = vpack.c.bf16 %v1652_v8, %v1649_v55 }
 0x1ec   : > { %v942_v56 = vpop.f32.mrf.mxu2 }
 0x1ed   : > { %1271 = vmatmul.msk.bf16.gmra.mxu3 %vm888_vm4, %v997_v9  ;;  %v943_v57 = vadd.f32 %v1611_v18, %v942_v56 }
 0x1ef   : > { %v970_v61 = vmax.f32 %v943_v57, 0.0 }
 0x1f1   : > { %v1660_v2 = vadd.f32 %v970_v61, %v1567_v33 }
 0x1f4   : > { %v944_v58 = vpop.f32.mrf.mxu2 }
 0x1f5   : > { %v945_v62 = vadd.f32 %v1611_v18, %v944_v58 }
 0x1f7   : > { %v971_v1 = vmax.f32 %v945_v62, 0.0 }
 0x1f9   : > { %v1663_v20 = vadd.f32 %v971_v1, %v1570_v34 }
 0x1fb   : > { %v998_v21 = vpack.c.bf16 %v1663_v20, %v1660_v2 }
 0x1fc   : > { %v947_v3 = vpop.f32.mrf.mxu2 }
 0x1fd   : > { %1272 = vmatmul.msk.bf16.gmra.mxu3 %vm888_vm4, %v998_v21  ;;  %v948_v4 = vadd.f32 %v1611_v18, %v947_v3 }
 0x1ff   : > { %v972_v6 = vmax.f32 %v948_v4, 0.0 }
 0x201   : > { %v1671_v11 = vadd.f32 %v972_v6, %v1578_v49 }
 0x204   : > { %v949_v5 = vpop.f32.mrf.mxu2 }
 0x205   : > { %v950_v7 = vadd.f32 %v1611_v18, %v949_v5 }
 0x207   : > { %v973_v10 = vmax.f32 %v950_v7, 0.0 }
 0x209   : > { %v1674_v33 = vadd.f32 %v973_v10, %v1581_v50 }
 0x20b   : > { %v999_v34 = vpack.c.bf16 %v1674_v33, %v1671_v11 }
 0x20c   : > { %v952_v12 = vpop.f32.mrf.mxu2 }
 0x20d   : > { %1273 = vmatmul.msk.bf16.gmra.mxu3 %vm888_vm4, %v999_v34  ;;  %v953_v13 = vadd.f32 %v1611_v18, %v952_v12 }
 0x20f   : > { %v974_v17 = vmax.f32 %v953_v13, 0.0 }
 0x211   : > { %v1682_v23 = vadd.f32 %v974_v17, %v1589_v63 }
 0x214   : > { %v954_v16 = vpop.f32.mrf.mxu2 }
 0x215   : > { %v955_v19 = vadd.f32 %v1611_v18, %v954_v16 }
 0x217   : > { %v975_v22 = vmax.f32 %v955_v19, 0.0 }
 0x219   : > { %v1685_v49 = vadd.f32 %v975_v22, %v1592_v0 }
 0x21b   : > { %v1000_v50 = vpack.c.bf16 %v1685_v49, %v1682_v23 }
 0x21c   : > { %v957_v24 = vpop.f32.mrf.mxu2 }
 0x21d   : > { %1274 = vmatmul.msk.bf16.gmra.mxu3 %vm888_vm4, %v1000_v50  ;;  %v958_v25 = vadd.f32 %v1611_v18, %v957_v24 }
 0x21f   : > { %v976_v28 = vmax.f32 %v958_v25, 0.0 }
 0x221   : > { %v1693_v63 = vadd.f32 %v976_v28, %v1600_v14 }
 0x224   : > { %v959_v27 = vpop.f32.mrf.mxu2 }
 0x225   : > { %v960_v29 = vadd.f32 %v1611_v18, %v959_v27 }
 0x227   : > { %v977_v32 = vmax.f32 %v960_v29, 0.0 }
 0x229   : > { %v1696_v0 = vadd.f32 %v977_v32, %v1603_v15 }
 0x22b   : > { %v1001_v30 = vpack.c.bf16 %v1696_v0, %v1693_v63 }
 0x22d   : > { %1275 = vmatmul.msk.bf16.gmra.mxu3 %vm888_vm4, %v1001_v30 }
 0x240   : > { %v1035_v31 = vpop.f32.mrf.mxu3 }
 0x241   : > { %v1036_v35 = vadd.f32 %v1611_v18, %v1035_v31 }
 0x243   : > { %v1075_v48 = vmax.f32 %v1036_v35, 0.0 }
 0x245   : > { %v1091_v14 = vadd.f32 %v1075_v48, %v1616_v43 }
 0x247   : > { %1107 = vst.msk [vmem:[%s1706_s29] sm:$0xff] %vm888_vm4, %v1091_v14 }
 0x248   : > { %v1037_v15 = vpop.f32.mrf.mxu3 }
 0x249   : > { %v1038_v37 = vadd.f32 %v1611_v18, %v1037_v15 }
 0x24b   : > { %v1076_v38 = vmax.f32 %v1038_v37, 0.0 }
 0x24d   : > { %v1092_v39 = vadd.f32 %v1076_v38, %v1619_v26 }
 0x24f   : > { %1108 = vst.msk [vmem:[%s1706_s29 + $0x8] sm:$0xff] %vm888_vm4, %v1092_v39 }
 0x250   : > { %v1040_v40 = vpop.f32.mrf.mxu3 }
 0x251   : > { %v1041_v41 = vadd.f32 %v1611_v18, %v1040_v40 }
 0x253   : > { %v1077_v42 = vmax.f32 %v1041_v41, 0.0 }
 0x255   : > { %v1093_v60 = vadd.f32 %v1077_v42, %v1627_v36 }
 0x257   : > { %1109 = vst.msk [vmem:[%s1706_s29 + $0x10] sm:$0xff] %vm888_vm4, %v1093_v60 }
 0x258   : > { %v1042_v43 = vpop.f32.mrf.mxu3 }
 0x259   : > { %v1043_v45 = vadd.f32 %v1611_v18, %v1042_v43 }
 0x25b   : > { %v1078_v46 = vmax.f32 %v1043_v45, 0.0 }
 0x25d   : > { %v1094_v51 = vadd.f32 %v1078_v46, %v1630_v47 }
 0x25f   : > { %1110 = vst.msk [vmem:[%s1706_s29 + $0x18] sm:$0xff] %vm888_vm4, %v1094_v51 }
 0x260   : > { %v1045_v26 = vpop.f32.mrf.mxu3 }
 0x261   : > { %v1046_v52 = vadd.f32 %v1611_v18, %v1045_v26 }
 0x263   : > { %v1079_v53 = vmax.f32 %v1046_v52, 0.0 }
 0x265   : > { %v1095_v54 = vadd.f32 %v1079_v53, %v1638_v44 }
 0x267   : > { %1111 = vst.msk [vmem:[%s1706_s29 + $0x20] sm:$0xff] %vm888_vm4, %v1095_v54 }
 0x268   : > { %v1047_v36 = vpop.f32.mrf.mxu3 }
 0x269   : > { %v1048_v9 = vadd.f32 %v1611_v18, %v1047_v36 }
 0x26b   : > { %v1080_v56 = vmax.f32 %v1048_v9, 0.0 }
 0x26d   : > { %v1096_v57 = vadd.f32 %v1080_v56, %v1641_v59 }
 0x26f   : > { %1112 = vst.msk [vmem:[%s1706_s29 + $0x28] sm:$0xff] %vm888_vm4, %v1096_v57 }
 0x270   : > { %v1050_v47 = vpop.f32.mrf.mxu3 }
 0x271   : > { %v1051_v58 = vadd.f32 %v1611_v18, %v1050_v47 }
 0x273   : > { %v1081_v61 = vmax.f32 %v1051_v58, 0.0 }
 0x275   : > { %v1097_v62 = vadd.f32 %v1081_v61, %v1649_v55 }
 0x277   : > { %1113 = vst.msk [vmem:[%s1706_s29 + $0x30] sm:$0xff] %vm888_vm4, %v1097_v62 }
 0x278   : > { %v1052_v44 = vpop.f32.mrf.mxu3 }
 0x279   : > { %v1053_v1 = vadd.f32 %v1611_v18, %v1052_v44 }
 0x27b   : > { %v1082_v21 = vmax.f32 %v1053_v1, 0.0 }
 0x27d   : > { %v1098_v3 = vadd.f32 %v1082_v21, %v1652_v8 }
 0x27f   : > { %1114 = vst.msk [vmem:[%s1706_s29 + $0x38] sm:$0xff] %vm888_vm4, %v1098_v3 }
 0x280   : > { %v1055_v59 = vpop.f32.mrf.mxu3 }
 0x281   : > { %v1056_v4 = vadd.f32 %v1611_v18, %v1055_v59 }
 0x283   : > { %v1083_v5 = vmax.f32 %v1056_v4, 0.0 }
 0x285   : > { %v1099_v6 = vadd.f32 %v1083_v5, %v1660_v2 }
 0x287   : > { %1115 = vst.msk [vmem:[%s1706_s29 + $0x40] sm:$0xff] %vm888_vm4, %v1099_v6 }
 0x288   : > { %v1057_v55 = vpop.f32.mrf.mxu3 }
 0x289   : > { %v1058_v7 = vadd.f32 %v1611_v18, %v1057_v55 }
 0x28b   : > { %v1084_v10 = vmax.f32 %v1058_v7, 0.0 }
 0x28d   : > { %v1100_v34 = vadd.f32 %v1084_v10, %v1663_v20 }
 0x28f   : > { %1116 = vst.msk [vmem:[%s1706_s29 + $0x48] sm:$0xff] %vm888_vm4, %v1100_v34 }
 0x290   : > { %v1060_v8 = vpop.f32.mrf.mxu3 }
 0x291   : > { %v1061_v12 = vadd.f32 %v1611_v18, %v1060_v8 }
 0x293   : > { %v1085_v13 = vmax.f32 %v1061_v12, 0.0 }
 0x295   : > { %v1101_v16 = vadd.f32 %v1085_v13, %v1671_v11 }
 0x297   : > { %1117 = vst.msk [vmem:[%s1706_s29 + $0x50] sm:$0xff] %vm888_vm4, %v1101_v16 }
 0x298   : > { %v1062_v2 = vpop.f32.mrf.mxu3 }
 0x299   : > { %v1063_v17 = vadd.f32 %v1611_v18, %v1062_v2 }
 0x29b   : > { %v1086_v19 = vmax.f32 %v1063_v17, 0.0 }
 0x29d   : > { %v1102_v22 = vadd.f32 %v1086_v19, %v1674_v33 }
 0x29f   : > { %1118 = vst.msk [vmem:[%s1706_s29 + $0x58] sm:$0xff] %vm888_vm4, %v1102_v22 }
 0x2a0   : > { %v1065_v20 = vpop.f32.mrf.mxu3 }
 0x2a1   : > { %v1066_v50 = vadd.f32 %v1611_v18, %v1065_v20 }
 0x2a3   : > { %v1087_v24 = vmax.f32 %v1066_v50, 0.0 }
 0x2a5   : > { %v1103_v25 = vadd.f32 %v1087_v24, %v1682_v23 }
 0x2a7   : > { %1119 = vst.msk [vmem:[%s1706_s29 + $0x60] sm:$0xff] %vm888_vm4, %v1103_v25 }
 0x2a8   : > { %v1067_v11 = vpop.f32.mrf.mxu3 }
 0x2a9   : > { %v1068_v27 = vadd.f32 %v1611_v18, %v1067_v11 }
 0x2ab   : > { %v1088_v28 = vmax.f32 %v1068_v27, 0.0 }
 0x2ad   : > { %v1104_v29 = vadd.f32 %v1088_v28, %v1685_v49 }
 0x2af   : > { %1120 = vst.msk [vmem:[%s1706_s29 + $0x68] sm:$0xff] %vm888_vm4, %v1104_v29 }
 0x2b0   : > { %v1070_v33 = vpop.f32.mrf.mxu3 }
 0x2b1   : > { %v1071_v32 = vadd.f32 %v1611_v18, %v1070_v33 }
 0x2b3   : > { %v1089_v30 = vmax.f32 %v1071_v32, 0.0 }
 0x2b5   : > { %v1105_v31 = vadd.f32 %v1089_v30, %v1693_v63 }
 0x2b7   : > { %1121 = vst.msk [vmem:[%s1706_s29 + $0x70] sm:$0xff] %vm888_vm4, %v1105_v31 }
 0x2b8   : > { %v1072_v23 = vpop.f32.mrf.mxu3 }
 0x2b9   : > { %v1073_v35 = vadd.f32 %v1611_v18, %v1072_v23 }
 0x2bb   : > { %v1090_v48 = vmax.f32 %v1073_v35, 0.0 }
 0x2bd   : > { %v1106_v14 = vadd.f32 %v1090_v48, %v1696_v0 }
 0x2bf   : > { %1122 = vst.msk [vmem:[%s1706_s29 + $0x78] sm:$0xff] %vm888_vm4, %v1106_v14 }
 0x2c0 PF: > { %s19_s30 = sadd.s32 1, %s1338_s30  }
 0x2c1   : > { %p16_p4 = scmp.ge.s32.totalorder %s19_s30, 4  }
 0x2c3   :  { %18 = sbr.rel (!%p16_p4) target bundleno = 1 (0x1), region = 92 }

// kernel: rosettafold_forward.6
= control target key start
LH: loop header
LB: loop body
LE: loop exit
PB: predicated region body
PF: predicated region fallthrough
CT: control target
= control target key end

     0   :  { %s364_s12 = smov 0   ;;  %s393_s0 = inlined_call_operand.vmem [shape: f32[64,48], index: 0, kind: input, shape index: {}]   ;;  %s394_s1 = inlined_call_operand.vmem [shape: bf16[48,32], index: 1, kind: input, shape index: {}]   ;;  %s395_s2 = inlined_call_operand.vmem [shape: f32[1,32], index: 2, kind: input, shape index: {}]   ;;  %s396_s3 = inlined_call_operand.vmem [shape: f32[64,32], index: 3, kind: output, shape index: {}]  }
   0x1 LB: > { %s296_s13 = sadd.s32 4294967295, %s342_s12   ;;  %p300_p0 = scmp.ge.s32.totalorder %s342_s12, 1  ;;  %s342_s12 = sphi %s364_s12, %s13_s12  }
   0x2   : > { %p138_p1 = scmp.lt.s32.totalorder %s342_s12, 3 }
   0x4   : > { %p139_p2 = pnand %p300_p0, %p138_p1 }
   0x5   : > { %s301_s16 = sshll.u32 (!%p139_p2), %s296_s13, 2 }
   0x6   : > { %142 = sbr.rel (%p139_p2) target bundleno = 161 (0xa1), region = 32  ;;  %p163_p3 = scmp.lt.s32.totalorder (!%p139_p2), %s301_s16, 7 }
   0xb   : > { %v323_v0 = vld [vmem:[%s394_s1 + $0x10] sm:$0xff]  ;;  %v322_v1 = vld [vmem:[%s394_s1 + $0x8] sm:$0xff]  ;;  %s398_s16 = smov (!%p163_p3, %s301_s16), 7  ;;  %v321_v2 = vld [vmem:[%s394_s1] sm:$0xff]  ;;  %vm209_vm0 = vcmask 392192   ;;  %vm235_vm1 = vcmask 261120  }
   0xc   : > { %221 = vmatpush.bf16.msra.mxu0 %v323_v0  ;;  %324 = vmatpush.bf16.msra.mxu1 %v323_v0  ;;  %s302_s19 = sshll.u32 %s398_s16, 3  ;;  %v335_v9 = vld [vmem:[%s395_s2] ss:$0 sm:$0xff] }
   0xd   : > { %s166_s24 = scalar_lea.vmem %s393_s0, %s302_s19  ;;  %s172_s29 = scalar_lea.vmem %s396_s3, %s302_s19 }
   0xe   : > { %v175_v3 = vld [vmem:[%s166_s24] sm:$0xff]  ;;  %v176_v4 = vld [vmem:[%s166_s24 + $0x8] sm:$0xff]  ;;  %v177_v5 = vld [vmem:[%s166_s24 + $0x10] sm:$0xff] }
   0xf   : > { %v178_v6 = vld [vmem:[%s166_s24 + $0x18] sm:$0xff]  ;;  %v185_v7 = vpack.c.bf16 %v176_v4, %v175_v3 }
  0x10   : > { %222 = vmatpush.bf16.msra.mxu0 %v322_v1  ;;  %325 = vmatpush.bf16.msra.mxu1 %v322_v1  ;;  %v186_v8 = vpack.c.bf16 %v178_v6, %v177_v5 }
  0x14   : > { %223 = vmatpush.bf16.msra.mxu0 %v321_v2  ;;  %326 = vmatpush.bf16.msra.mxu1 %v321_v2 }
  0x17   : > { %317 = vmatmul.msk.bf16.vlgmr.msra.gmra.mxu0 %vm209_vm0, %v185_v7  ;;  %318 = vmatmul.msk.bf16.vlgmr.msra.gmra.mxu1 %vm209_vm0, %v186_v8 }
  0x94   : > { %v225_v10 = vpop.f32.mrf.mxu0  ;;  %v230_v11 = vpop.f32.mrf.mxu1 }
  0x95   : > { %v226_v12 = vadd.f32 %v335_v9, %v225_v10  ;;  %v231_v16 = vadd.f32 %v335_v9, %v230_v11 }
  0x97   : > { %236 = vst.msk [vmem:[%s172_s29] sm:$0xff] %vm235_vm1, %v226_v12 }
  0x98   : > { %238 = vst.msk [vmem:[%s172_s29 + $0x10] sm:$0xff] %vm235_vm1, %v231_v16 }
  0x9c   : > { %v227_v13 = vpop.f32.mrf.mxu0  ;;  %v232_v14 = vpop.f32.mrf.mxu1 }
  0x9d   : > { %v228_v15 = vadd.f32 %v335_v9, %v227_v13  ;;  %v233_v17 = vadd.f32 %v335_v9, %v232_v14 }
  0x9f   : > { %237 = vst.msk [vmem:[%s172_s29 + $0x8] sm:$0xff] %vm235_vm1, %v228_v15 }
  0xa0   : > { %239 = vst.msk [vmem:[%s172_s29 + $0x18] sm:$0xff] %vm235_vm1, %v233_v17 }
  0xa1 PF: > { %s13_s12 = sadd.s32 1, %s342_s12  }
  0xa2   : > { %p10_p4 = scmp.ge.s32.totalorder %s13_s12, 4  }
  0xa4   :  { %12 = sbr.rel (!%p10_p4) target bundleno = 1 (0x1), region = 62 }

// kernel: rosettafold_forward.8
= control target key start
LH: loop header
LB: loop body
LE: loop exit
PB: predicated region body
PF: predicated region fallthrough
CT: control target
= control target key end

     0   :  { %s605_s21 = smov 0   ;;  %s658_s0 = inlined_call_operand.vmem [shape: f32[64,32], index: 0, kind: input, shape index: {}]   ;;  %s659_s1 = inlined_call_operand.vmem [shape: bf16[32,32], index: 1, kind: input, shape index: {}]   ;;  %s660_s2 = inlined_call_operand.vmem [shape: f32[1,32], index: 2, kind: input, shape index: {}]   ;;  %s661_s3 = inlined_call_operand.vmem [shape: bf16[32,21], index: 3, kind: input, shape index: {}]   ;;  %s662_s4 = inlined_call_operand.vmem [shape: f32[1,21], index: 4, kind: input, shape index: {}]   ;;  %s663_s5 = inlined_call_operand.vmem [shape: f32[64,32], index: 5, kind: output, shape index: {0}]   ;;  %s664_s6 = inlined_call_operand.vmem [shape: f32[64,21], index: 6, kind: output, shape index: {1}]  }
   0x1 LB: > { %s511_s22 = sadd.s32 4294967295, %s568_s21   ;;  %p515_p0 = scmp.ge.s32.totalorder %s568_s21, 1  ;;  %s568_s21 = sphi %s605_s21, %s17_s21  }
   0x2   : > { %p216_p1 = scmp.lt.s32.totalorder %s568_s21, 3 }
   0x4   : > { %p217_p2 = pnand %p515_p0, %p216_p1 }
   0x5   : > { %s516_s25 = sshll.u32 (!%p217_p2), %s511_s22, 2 }
   0x6   : > { %220 = sbr.rel (%p217_p2) target bundleno = 462 (0x1ce), region = 40  ;;  %p252_p3 = scmp.lt.s32.totalorder (!%p217_p2), %s516_s25, 7 }
   0xb   : > { %v547_v0 = vld [vmem:[%s659_s1 + $0x8] sm:$0xff]  ;;  %v546_v1 = vld [vmem:[%s659_s1] sm:$0xff]  ;;  %s666_s25 = smov (!%p252_p3, %s516_s25), 7  ;;  %vm296_vm0 = vcmask 261120   ;;  %vm416_vm1 = vcmask 171008  }
   0xc   : > { %309 = vmatpush.bf16.msra.mxu0 %v547_v0  ;;  %550 = vmatpush.bf16.msra.mxu3 %v547_v0  ;;  %s619_s28 = sshll.u32 %s666_s25, 3  ;;  %v560_v9 = vld [vmem:[%s660_s2] ss:$0 sm:$0xff]  ;;  %v549_v27 = vld [vmem:[%s661_s3 + $0x8] sm:$0xff] }
   0xd   : > { %344 = vmatpush.bf16.msra.mxu1 %v547_v0  ;;  %s255_s7 = scalar_lea.vmem %s658_s0, %s619_s28  ;;  %403 = vmatpush.bf16.msra.mxu2 %v549_v27  ;;  %v548_v28 = vld [vmem:[%s661_s3] sm:$0xff]  ;;  %s261_s16 = scalar_lea.vmem %s663_s5, %s619_s28 }
   0xe   : > { %v270_v2 = vld [vmem:[%s255_s7] sm:$0xff]  ;;  %v271_v3 = vld [vmem:[%s255_s7 + $0x8] sm:$0xff]  ;;  %v272_v4 = vld [vmem:[%s255_s7 + $0x10] sm:$0xff]  ;;  %s267_s22 = scalar_lea.vmem %s664_s6, %s619_s28 }
   0xf   : > { %v278_v5 = vpack.c.bf16 %v271_v3, %v270_v2  ;;  %v273_v6 = vld [vmem:[%s255_s7 + $0x18] sm:$0xff]  ;;  %v561_v47 = vld [vmem:[%s662_s4] ss:$0 sm:$0xff] }
  0x10   : > { %310 = vmatpush.bf16.msra.mxu0 %v546_v1  ;;  %551 = vmatpush.bf16.msra.mxu3 %v546_v1  ;;  %v279_v7 = vpack.c.bf16 %v273_v6, %v272_v4 }
  0x11   : > { %345 = vmatpush.bf16.msra.mxu1 %v546_v1  ;;  %404 = vmatpush.bf16.msra.mxu2 %v548_v28 }
  0x13   : > { %530 = vmatmul.msk.bf16.vlgmr.msra.gmra.mxu0 %vm296_vm0, %v278_v5  ;;  %531 = vmatmul.msk.bf16.vlgmr.msra.gmra.mxu3 %vm296_vm0, %v279_v7 }
  0x90   : > { %v312_v8 = vpop.f32.mrf.mxu0 }
  0x91   : > { %v313_v10 = vadd.f32 %v560_v9, %v312_v8 }
  0x93   : > { %v322_v13 = vmax.f32 %v313_v10, 0.0 }
  0x95   : > { %v326_v16 = vadd.f32 %v322_v13, %v270_v2 }
  0x96   : > { %v317_v11 = vpop.f32.mrf.mxu3 }
  0x97   : > { %v318_v20 = vadd.f32 %v560_v9, %v317_v11 }
  0x98   : > { %v314_v12 = vpop.f32.mrf.mxu0 }
  0x99   : > { %v315_v14 = vadd.f32 %v560_v9, %v314_v12  ;;  %v324_v22 = vmax.f32 %v318_v20, 0.0 }
  0x9b   : > { %v323_v15 = vmax.f32 %v315_v14, 0.0  ;;  %v328_v24 = vadd.f32 %v324_v22, %v272_v4 }
  0x9d   : > { %v327_v17 = vadd.f32 %v323_v15, %v271_v3 }
  0x9e   : > { %v319_v19 = vpop.f32.mrf.mxu3 }
  0x9f   : > { %v330_v18 = vpack.c.bf16 %v327_v17, %v326_v16  ;;  %v320_v21 = vadd.f32 %v560_v9, %v319_v19 }
  0xa1   : > { %532 = vmatmul.msk.bf16.vlgmr.msra.gmra.mxu1 %vm296_vm0, %v330_v18  ;;  %v325_v23 = vmax.f32 %v320_v21, 0.0 }
  0xa3   : > { %v329_v25 = vadd.f32 %v325_v23, %v273_v6 }
  0xa5   : > { %v331_v26 = vpack.c.bf16 %v329_v25, %v328_v24 }
  0xb1   : > { %533 = vmatmul.msk.bf16.gmra.mxu1 %vm296_vm0, %v331_v26 }
 0x11e   : > { %v347_v29 = vpop.f32.mrf.mxu1 }
 0x11f   : > { %v348_v30 = vadd.f32 %v560_v9, %v347_v29 }
 0x121   : > { %v357_v31 = vmax.f32 %v348_v30, 0.0 }
 0x123   : > { %v361_v32 = vadd.f32 %v357_v31, %v326_v16 }
 0x125   : > { %365 = vst.msk [vmem:[%s261_s16] sm:$0xff] %vm296_vm0, %v361_v32 }
 0x126   : > { %v349_v33 = vpop.f32.mrf.mxu1 }
 0x127   : > { %v350_v34 = vadd.f32 %v560_v9, %v349_v33 }
 0x129   : > { %v358_v35 = vmax.f32 %v350_v34, 0.0 }
 0x12b   : > { %v362_v36 = vadd.f32 %v358_v35, %v327_v17 }
 0x12d   : > { %366 = vst.msk [vmem:[%s261_s16 + $0x8] sm:$0xff] %vm296_vm0, %v362_v36  ;;  %v373_v37 = vpack.c.bf16 %v362_v36, %v361_v32 }
 0x12e   : > { %v352_v38 = vpop.f32.mrf.mxu1 }
 0x12f   : > { %v353_v39 = vadd.f32 %v560_v9, %v352_v38  ;;  %542 = vmatmul.msk.bf16.vlgmr.msra.gmra.mxu2 %vm296_vm0, %v373_v37 }
 0x131   : > { %v359_v40 = vmax.f32 %v353_v39, 0.0 }
 0x133   : > { %v363_v41 = vadd.f32 %v359_v40, %v328_v24 }
 0x135   : > { %367 = vst.msk [vmem:[%s261_s16 + $0x10] sm:$0xff] %vm296_vm0, %v363_v41 }
 0x136   : > { %v354_v42 = vpop.f32.mrf.mxu1 }
 0x137   : > { %v355_v43 = vadd.f32 %v560_v9, %v354_v42 }
 0x139   : > { %v360_v44 = vmax.f32 %v355_v43, 0.0 }
 0x13b   : > { %v364_v45 = vadd.f32 %v360_v44, %v329_v25 }
 0x13d   : > { %368 = vst.msk [vmem:[%s261_s16 + $0x18] sm:$0xff] %vm296_vm0, %v364_v45  ;;  %v374_v46 = vpack.c.bf16 %v364_v45, %v363_v41 }
 0x13f   : > { %543 = vmatmul.msk.bf16.gmra.mxu2 %vm296_vm0, %v374_v46 }
 0x1b2   : > { %v406_v48 = vpop.f32.mrf.mxu2 }
 0x1b3   : > { %v407_v49 = vadd.f32 %v561_v47, %v406_v48 }
 0x1b5   : > { %417 = vst.msk [vmem:[%s267_s22] sm:$0xff] %vm416_vm1, %v407_v49 }
 0x1ba   : > { %v408_v50 = vpop.f32.mrf.mxu2 }
 0x1bb   : > { %v409_v51 = vadd.f32 %v561_v47, %v408_v50 }
 0x1bd   : > { %418 = vst.msk [vmem:[%s267_s22 + $0x8] sm:$0xff] %vm416_vm1, %v409_v51 }
 0x1c2   : > { %v411_v52 = vpop.f32.mrf.mxu2 }
 0x1c3   : > { %v412_v53 = vadd.f32 %v561_v47, %v411_v52 }
 0x1c5   : > { %419 = vst.msk [vmem:[%s267_s22 + $0x10] sm:$0xff] %vm416_vm1, %v412_v53 }
 0x1ca   : > { %v413_v54 = vpop.f32.mrf.mxu2 }
 0x1cb   : > { %v414_v55 = vadd.f32 %v561_v47, %v413_v54 }
 0x1cd   : > { %420 = vst.msk [vmem:[%s267_s22 + $0x18] sm:$0xff] %vm416_vm1, %v414_v55 }
 0x1ce PF: > { %s17_s21 = sadd.s32 1, %s568_s21  }
 0x1cf   : > { %p14_p4 = scmp.ge.s32.totalorder %s17_s21, 4  }
 0x1d1   :  { %16 = sbr.rel (!%p14_p4) target bundleno = 1 (0x1), region = 82 }

// kernel: rosettafold_forward.11
= control target key start
LH: loop header
LB: loop body
LE: loop exit
PB: predicated region body
PF: predicated region fallthrough
CT: control target
= control target key end

     0   :  { %s970_s0 = inlined_call_operand.vmem [shape: f32[16,16], index: 0, kind: input, shape index: {}]   ;;  %s971_s1 = inlined_call_operand.vmem [shape: f32[16,32], index: 1, kind: input, shape index: {}]   ;;  %s972_s2 = inlined_call_operand.vmem [shape: f32[1,16], index: 2, kind: input, shape index: {}]   ;;  %s973_s3 = inlined_call_operand.vmem [shape: f32[1,16], index: 3, kind: input, shape index: {}]   ;;  %s974_s4 = inlined_call_operand.vmem [shape: bf16[16,50], index: 4, kind: input, shape index: {}]   ;;  %s975_s5 = inlined_call_operand.vmem [shape: f32[1,50], index: 5, kind: input, shape index: {}]   ;;  %s976_s6 = inlined_call_operand.vmem [shape: bf16[32,1], index: 6, kind: input, shape index: {}]   ;;  %s977_s7 = inlined_call_operand.vmem [shape: bf16[16,1], index: 7, kind: input, shape index: {}]   ;;  %s978_s8 = inlined_call_operand.<no memory space> [shape: f32[1,1], index: 8, kind: input, shape index: {}]   ;;  %s979_s9 = inlined_call_operand.hbm [shape: f32[16,50], index: 9, kind: output, shape index: {0}]   ;;  %s980_s10 = inlined_call_operand.vmem [shape: f32[16,1], index: 10, kind: output, shape index: {1}]  }
   0x1   :  { %981 = sst [smem:[#allocation6_spill]] %s970_s0  ;;  %v16_v0 = vstv %s978_s8 }
   0x2   :  { %17 = vst [vmem:[#allocation2] sm:$0x1] %v16_v0 }
   0x3   :  { %18 = vsyncpa [#allocation4], 0 }
   0x4   :  { %20 = vsyncpa [#allocation4 + $0x1], 0  ;;  %s849_s15 = smov 0   ;;  %s851_s16 = smov 0  }
   0x5   :  { %s853_s17 = smov 0   ;;  %s855_s18 = smov 0  }
   0x6 LB: > { %s870_s8 = sadd.s32 4294967295, %s788_s18   ;;  %s643_s19 = sadd.s32 4294967294, %s788_s18   ;;  %s788_s18 = sphi %s855_s18, %s988_s18   ;;  %s784_s17 = sphi %s853_s17, %s987_s17   ;;  %s780_s16 = sphi %s851_s16, %s986_s16   ;;  %s776_s15 = sphi %s849_s15, %s985_s15  }
   0x7   : > { %s874_s20 = sadd.s32 1, %s788_s18   ;;  %s232_s21 = sadd.s32 1, %s784_s17 }
   0x8   : > { %s229_s22 = ssub.s32 %s788_s18, %s874_s20  ;;  %p242_p0 = scmp.ne.s32.totalorder %s784_s17, %s780_s16 }
   0x9   : > { %p230_p1 = scmp.eq.s32.totalorder %s229_s22, 0  ;;  %p243_p2 = scmp.eq.s32.totalorder %s870_s8, 1 }
   0xa   : > { %p248_p3 = scmp.ne.s32.totalorder %s780_s16, %s776_s15  ;;  %p249_p4 = scmp.eq.s32.totalorder %s643_s19, 1 }
   0xb   : > { %s885_s23 = scalar_select %p230_p1, %s784_s17, %s232_s21  }
   0xc   : > { %p887_p5 = por %p243_p2, %p242_p0  ;;  %p891_p6 = por %p249_p4, %p248_p3 }
   0xd   : > { %p646_p7 = scmp.ge.s32.totalorder %s788_s18, 1  ;;  %p328_p8 = scmp.lt.s32.totalorder %s788_s18, 3 }
   0xf   : > { %p329_p9 = pnand %p646_p7, %p328_p8 }
  0x10   : > { %p373_p10 = scmp.lt.s32.totalorder (!%p329_p9), %s870_s8, 1  ;;  %s984_s0 = sld [smem:[#allocation6_spill]] (!%p329_p9) }
  0x11   : > { %332 = sbr.rel (%p329_p9) target bundleno = 431 (0x1af), region = 56  ;;  %s671_s28 = sshll.u32 (!%p329_p9), %s870_s8, 3 }
  0x12   : > { %s540_s12 = scalar_lea.hbm (!%p329_p9), %s979_s9, %s671_s28 }
  0x16   : > { %s374_s26 = scalar_select %p373_p10, %s870_s8, 1  ;;  %vm387_vm0 = vcmask 130048   ;;  %v790_v3 = vmov 16.0   ;;  %v676_v15 = vld [vmem:[%s976_s6 + $0x8] sm:$0xff]  ;;  %v675_v16 = vld [vmem:[%s976_s6] sm:$0xff]  ;;  %vm501_vm2 = vcmask 261120  }
  0x17   : > { %722 = vrcp.f32 %v790_v3  ;;  %511 = vmatpush.bf16.msra.mxu2 %v676_v15  ;;  %v677_v19 = vld [vmem:[%s977_s7] sm:$0xff]  ;;  %vm523_vm6 = vcmask 7168   ;;  %vm456_vm7 = vcmask 408576  }
  0x18   : > { %s899_s27 = sshll.u32 %s374_s26, 3  ;;  %483 = vmatpush.bf16.msra.mxu1 %v677_v19  ;;  %v674_v21 = vld [vmem:[%s974_s4] sm:$0xff]  ;;  %s364_s26 = sand.u32 1, %s780_s16  }
  0x19   : > { %s376_s30 = scalar_lea.vmem %s984_s0, %s899_s27  ;;  %s380_s19 = scalar_lea.vmem %s971_s1, %s899_s27  ;;  %450 = vmatpush.bf16.msra.mxu0 %v674_v21  ;;  %v718_v31 = vld [vmem:[%s972_s2] ss:$0 sm:$0xff] }
  0x1a   : > { %v386_v1 = vld [vmem:[%s376_s30] sm:$0xff]  ;;  %s384_s22 = scalar_lea.vmem %s980_s10, %s899_s27  ;;  %s647_s29 = sshll.u32 %s364_s26, 3 }
  0x1b   : > { %v388_v2 = vsel %vm387_vm0, %v386_v1, 0.0  ;;  %512 = vmatpush.bf16.msra.mxu2 %v675_v16  ;;  %v458_v17 = vld [vmem:[%s380_s19] sm:$0xff]  ;;  %v466_v20 = vpack.c.bf16 %v386_v1, %v386_v1  ;;  %s366_s0 = scalar_lea.vmem [#allocation3], %s647_s29  ;;  %s544_s27 = sshll.u32 %s540_s12, 4  ;;  %s545_s27 = int_to_ptr.hbm [resolvable:$true] %s544_s27 }
  0x1c   : > { %389 = vadd.xlane.f32.xlu0 %v388_v2  ;;  %v463_v18 = vpack.c.bf16 %v458_v17, %v458_v17  ;;  %v719_v34 = vld [vmem:[%s973_s3] ss:$0 sm:$0xff]  ;;  %s542_s19 = sshll.u32 %s366_s0, 4  ;;  %s526_s8 = scalar_lea.sflag [#allocation4], %s364_s26  ;;  %s543_s19 = int_to_ptr.vmem [resolvable:$true] %s542_s19 }
  0x1d   : > { %v723_v4 = vpop.eup %722  ;;  %660 = vmatmul.msk.bf16.vlgmr.msra.gmra.mxu1 %vm387_vm0, %v466_v20  ;;  %v720_v38 = vld [vmem:[#allocation2] ss:$0 sm:$0xff]  ;;  %s740_s21 = sshra.s32 %s545_s27, 4  ;;  %s746_s29 = scalar_lea.hbm %s979_s9, 16  ;;  %s741_s21 = int_to_ptr.hbm [resolvable:$true] %s740_s21 }
  0x1e   : > { %v392_v5 = vmul.f32 16.0, %v723_v4  ;;  %vm396_vm1 = vweird.f32 %v723_v4  ;;  %669 = vmatmul.msk.bf16.vlgmr.msra.gmra.mxu2 %vm501_vm2, %v463_v18  ;;  %v721_v45 = vld [vmem:[%s975_s5] ss:$0 sm:$0xff]  ;;  %p747_p0 = scmp.lt.s32.totalorder %s741_s21, %s979_s9 }
  0x20   : > { %v393_v6 = vsub.f32 1.0, %v392_v5 }
  0x22   : > { %v394_v7 = vmul.f32 %v723_v4, %v393_v6 }
  0x24   : > { %v395_v8 = vadd.f32 %v723_v4, %v394_v7 }
  0x26   : > { %v397_v9 = vsel %vm396_vm1, %v723_v4, %v395_v8 }
  0x8f   : > { %v390_v10 = vpop.xlane.xlu0 %389 }
  0x90   : > { %v398_v11 = vmul.f32 %v397_v9, %v390_v10 }
  0x92   : > { %v399_v12 = vsub.f32 %v386_v1, %v398_v11 }
  0x94   : > { %v400_v13 = vmul.f32 %v399_v12, %v399_v12 }
  0x96   : > { %v401_v14 = vsel %vm387_vm0, %v400_v13, 0.0 }
  0x97   : > { %402 = vadd.xlane.f32.xlu0 %v401_v14 }
  0x9a   : > { %v485_v39 = vpop.f32.mrf.mxu1 }
  0xa1   : > { %v514_v40 = vpop.f32.mrf.mxu2 }
  0xa2   : > { %v515_v41 = vadd.f32 %v514_v40, %v485_v39  ;;  %v487_v43 = vpop.f32.mrf.mxu1 }
  0xa4   : > { %v522_v42 = vadd.f32 %v720_v38, %v515_v41 }
  0xa6   : > { %524 = vst.msk [vmem:[%s384_s22] sm:$0xff] %vm523_vm6, %v522_v42  ;;  %s742_s22 = scalar_lea.hbm %s741_s21, 8 }
  0xa7   : > { %p743_p11 = scmp.ne.s32.totalorder %s741_s21, %s742_s22  ;;  %p748_p1 = scmp.lt.s32.totalorder %s746_s29, %s742_s22 }
  0xa9   : > { %v516_v44 = vpop.f32.mrf.mxu2  ;;  %p744_p12 = pnand %p743_p11, %p887_p5  ;;  %p749_p2 = por %p748_p1, %p747_p0 }
  0xab   : > { %p745_p13 = pneg %p744_p12 }
  0xad   : > { %p750_p3 = pnand %p749_p2, %p745_p13 }
 0x10a   : > { %v403_v22 = vpop.xlane.xlu0 %402 }
 0x10b   : > { %v404_v23 = vmul.f32 %v403_v22, %v397_v9 }
 0x10d   : > { %v405_v24 = vadd.f32 1e-05, %v404_v23 }
 0x10f   : > { %724 = vrsqrt.f32 %v405_v24  ;;  %vm412_vm4 = vweird.f32 %v405_v24 }
 0x115   : > { %v725_v25 = vpop.eup %724 }
 0x116   : > { %v407_v26 = vmul.f32 %v725_v25, %v405_v24  ;;  %vm413_vm3 = vweird.f32 %v725_v25 }
 0x117   : > { %vm414_vm5 = vmor %vm412_vm4, %vm413_vm3 }
 0x118   : > { %v408_v27 = vmul.f32 %v725_v25, %v407_v26 }
 0x11a   : > { %v409_v28 = vmul.f32 0.5, %v408_v27 }
 0x11c   : > { %v410_v29 = vsub.f32 1.5, %v409_v28 }
 0x11e   : > { %v411_v30 = vmul.f32 %v725_v25, %v410_v29 }
 0x120   : > { %v415_v32 = vsel %vm414_vm5, %v725_v25, %v411_v30 }
 0x121   : > { %v416_v33 = vmul.f32 %v415_v32, %v399_v12 }
 0x123   : > { %v421_v35 = vmul.f32 %v718_v31, %v416_v33 }
 0x125   : > { %v426_v36 = vadd.f32 %v719_v34, %v421_v35 }
 0x127   : > { %v429_v37 = vpack.c.bf16 %v426_v36, %v426_v36 }
 0x129   : > { %655 = vmatmul.msk.bf16.vlgmr.msra.gmra.mxu0 %vm387_vm0, %v429_v37 }
 0x1a6   : > { %v452_v46 = vpop.f32.mrf.mxu0 }
 0x1a7   : > { %v453_v47 = vadd.f32 %v721_v45, %v452_v46 }
 0x1a9   : > { %457 = vst.msk [vmem:[%s366_s0] sm:$0xff] %vm456_vm7, %v453_v47 }
 0x1aa   : > { %753 = shalt.err (!%p750_p3)
}
 0x1ab   : > { %678 = dma.vmem_to_hbm [thread:$0]  (%p887_p5), %s543_s19, 128, %s545_s27, %s526_s8  }
 0x1ae   : > { %v454_v48 = vpop.f32.mrf.mxu0 }
 0x1af PF: > { %p684_p4 = scmp.ge.s32.totalorder %s788_s18, 2  ;;  %s559_s0 = sand.u32 1, %s776_s15  }
 0x1b0   : > { %s560_s26 = scalar_lea.sflag [#allocation4], %s559_s0 }
 0x1b1   : > { %p681_p7 = pnand %p684_p4, %p891_p6 }
 0x1b3   : > { %p682_p8 = pneg %p681_p7 }
 0x1b5   : > { %771 = dma.done.wait (%p682_p8), %s560_s26, 128  }
 0x1b6   : > { %773 = vsyncadd (%p682_p8), %s560_s26, 4294967168  ;;  %p23_p9 = scmp.ge.s32.totalorder %s874_s20, 4   ;;  %s985_s15 = smov %s780_s16 }
 0x1b7   : > { %s986_s16 = smov %s784_s17  ;;  %s987_s17 = smov %s885_s23 }
 0x1b8   : > { %s988_s18 = smov %s874_s20  ;;  %25 = sbr.rel (!%p23_p9) target bundleno = 6 (0x6), region = 106 }
 0x1bd   :  { %573 = vsyncpa [#allocation4], 1 }
 0x1be   :  { %575 = vsyncpa [#allocation4 + $0x1], 1 }

// kernel: rosettafold_forward.9
= control target key start
LH: loop header
LB: loop body
LE: loop exit
PB: predicated region body
PF: predicated region fallthrough
CT: control target
= control target key end

     0   :  { %s803_s30 = smov 0   ;;  %s805_s10 = smov 0   ;;  %s905_s0 = inlined_call_operand.vmem [shape: f32[16,16], index: 0, kind: input, shape index: {}]   ;;  %s906_s1 = inlined_call_operand.vmem [shape: f32[16,22], index: 1, kind: input, shape index: {}]   ;;  %s907_s2 = inlined_call_operand.vmem [shape: bf16[22,16], index: 2, kind: input, shape index: {}]   ;;  %s908_s3 = inlined_call_operand.vmem [shape: f32[1,16], index: 3, kind: input, shape index: {}, may-alias: {3,5}]   ;;  %s909_s4 = inlined_call_operand.vmem [shape: bf16[16,16], index: 4, kind: input, shape index: {}]   ;;  %s910_s5 = inlined_call_operand.vmem [shape: f32[1,16], index: 5, kind: input, shape index: {}, may-alias: {3,5}]   ;;  %s911_s6 = inlined_call_operand.vmem [shape: bf16[16,23], index: 6, kind: input, shape index: {}]   ;;  %s912_s7 = inlined_call_operand.vmem [shape: f32[1,23], index: 7, kind: input, shape index: {}]   ;;  %s913_s8 = inlined_call_operand.vmem [shape: f32[16,16], index: 8, kind: output, shape index: {0}]   ;;  %s914_s9 = inlined_call_operand.vmem [shape: f32[2,16,23], index: 9, kind: output, shape index: {1}]  }
   0x1   :  { %s807_s11 = smov 0  }
   0x2 LB: > { %s816_s12 = sadd.s32 4294967295, %s751_s11   ;;  %s818_s13 = sadd.s32 1, %s751_s11   ;;  %s751_s11 = sphi %s807_s11, %s918_s11   ;;  %s747_s10 = sphi %s805_s10, %s917_s10   ;;  %s743_s30 = sphi %s803_s30, %s916_s30  }
   0x3   : > { %s228_s14 = ssub.s32 %s751_s11, %s818_s13  ;;  %s231_s15 = sadd.s32 1, %s747_s10 }
   0x4   : > { %p229_p0 = scmp.eq.s32.totalorder %s228_s14, 0  ;;  %p241_p1 = scmp.ne.s32.totalorder %s747_s10, %s743_s30 }
   0x5   : > { %p242_p2 = scmp.eq.s32.totalorder %s816_s12, 1  ;;  %p660_p3 = scmp.ge.s32.totalorder %s751_s11, 1 }
   0x6   : > { %s826_s16 = scalar_select %p229_p0, %s747_s10, %s231_s15  }
   0x7   : > { %p828_p4 = por %p242_p2, %p241_p1  ;;  %p298_p5 = scmp.lt.s32.totalorder %s751_s11, 3 }
   0x9   : > { %p299_p6 = pnand %p660_p3, %p298_p5 }
   0xa   : > { %p340_p7 = scmp.lt.s32.totalorder (!%p299_p6), %s816_s12, 1  ;;  %s337_s28 = sand.u32 (!%p299_p6), 1, %s743_s30  }
   0xb   : > { %302 = sbr.rel (%p299_p6) target bundleno = 572 (0x23c), region = 52  ;;  %s661_s29 = sshll.u32 (!%p299_p6), %s337_s28, 4 }
   0xc   : > { %s339_s19 = scalar_lea.vmem (!%p299_p6), [#allocation2], %s661_s29 }
  0x10   : > { %v357_v0 = vld [vmem:[%s907_s2 + $0x8] sm:$0x7]  ;;  %vm372_vm0 = vcmask 1042432   ;;  %s341_s20 = scalar_select %p340_p7, %s816_s12, 1  ;;  %v695_v4 = vld [vmem:[%s907_s2] sm:$0xff]  ;;  %vm368_vm1 = vcmask 179200  }
  0x11   : > { %v364_v1 = vunpack.c.l.b16 %v357_v0  ;;  %v696_v7 = vld [vmem:[%s909_s4] sm:$0xff]  ;;  %vm408_vm2 = vcmask 130048   ;;  %vm456_vm3 = vcmask 187392  }
  0x12   : > { %s837_s21 = sshll.u32 %s341_s20, 3  ;;  %419 = vmatpush.bf16.msra.mxu1 %v696_v7  ;;  %v724_v9 = vld [vmem:[%s908_s3] ss:$0 sm:$0xff] }
  0x13   : > { %v366_v2 = vpack.c.b16 %v364_v1, %v364_v1  ;;  %s347_s24 = scalar_lea.vmem %s906_s1, %s837_s21  ;;  %s343_s14 = scalar_lea.vmem %s905_s0, %s837_s21  ;;  %v697_v15 = vld [vmem:[%s911_s6] sm:$0xff] }
  0x14   : > { %v354_v5 = vld [vmem:[%s347_s24] sm:$0xff]  ;;  %450 = vmatpush.bf16.msra.mxu2 %v697_v15  ;;  %s351_s22 = scalar_lea.vmem %s913_s8, %s837_s21  ;;  %s692_s21 = sshll.u32 (%p828_p4), %s816_s12, 3 }
  0x15   : > { %v374_v3 = vsel %vm372_vm0, %v366_v2, 0  ;;  %v358_v6 = vpack.c.bf16 %v354_v5, %v354_v5  ;;  %v353_v8 = vld [vmem:[%s343_s14] sm:$0xff]  ;;  %s532_s27 = scalar_lea.vmem (%p828_p4), %s914_s9, %s692_s21 }
  0x16   : > { %382 = vmatpush.bf16.msra.mxu0 %v374_v3  ;;  %v698_v16 = vld [vmem:[%s909_s4] sm:$0xff] }
  0x17   : > { %477 = vmatpush.bf16.msra.mxu3 %v698_v16  ;;  %v699_v17 = vld [vmem:[%s911_s6] sm:$0xff] }
  0x18   : > { %508 = vmatpush.bf16.msrb.mxu1 %v699_v17  ;;  %v725_v18 = vld [vmem:[%s910_s5] ss:$0 sm:$0xff] }
  0x19   : > { %v726_v25 = vld [vmem:[%s912_s7] ss:$0 sm:$0xff] }
  0x1a   : > { %383 = vmatpush.bf16.msra.mxu0 %v695_v4  ;;  %v727_v26 = vld [vmem:[%s910_s5] ss:$0 sm:$0xff] }
  0x1b   : > { %v728_v36 = vld [vmem:[%s912_s7] ss:$0 sm:$0xff] }
  0x1d   : > { %669 = vmatmul.msk.bf16.vlgmr.msra.gmra.mxu0 %vm368_vm1, %v358_v6 }
  0x9a   : > { %v385_v10 = vpop.f32.mrf.mxu0 }
  0x9b   : > { %v389_v11 = vadd.f32 %v385_v10, %v353_v8 }
  0x9d   : > { %v394_v12 = vadd.f32 %v724_v9, %v389_v11 }
  0x9f   : > { %v397_v13 = vpack.c.bf16 %v394_v12, %v394_v12 }
  0xa1   : > { %674 = vmatmul.msk.bf16.vlgmr.msra.gmra.mxu1 %vm408_vm2, %v397_v13 }
  0xa2   : > { %v387_v14 = vpop.f32.mrf.mxu0 }
 0x11e   : > { %v421_v19 = vpop.f32.mrf.mxu1 }
 0x11f   : > { %v422_v20 = vadd.f32 %v725_v18, %v421_v19 }
 0x121   : > { %v425_v21 = vmax.f32 %v422_v20, 0.0 }
 0x123   : > { %v426_v22 = vadd.f32 %v425_v21, %v394_v12 }
 0x125   : > { %v429_v23 = vpack.c.bf16 %v426_v22, %v426_v22 }
 0x126   : > { %v423_v24 = vpop.f32.mrf.mxu1 }
 0x127   : > { %679 = vmatmul.msk.bf16.vlgmr.msra.gmra.mxu2 %vm408_vm2, %v429_v23  ;;  %684 = vmatmul.msk.bf16.vlgmr.msra.gmra.mxu3 %vm408_vm2, %v429_v23 }
 0x1aa   : > { %v452_v27 = vpop.f32.mrf.mxu2  ;;  %v479_v28 = vpop.f32.mrf.mxu3 }
 0x1ab   : > { %v453_v29 = vadd.f32 %v726_v25, %v452_v27  ;;  %v480_v30 = vadd.f32 %v727_v26, %v479_v28 }
 0x1ad   : > { %457 = vst.msk [vmem:[%s339_s19] sm:$0xff] %vm456_vm3, %v453_v29  ;;  %v483_v31 = vmax.f32 %v480_v30, 0.0 }
 0x1af   : > { %v484_v32 = vadd.f32 %v483_v31, %v426_v22 }
 0x1b1   : > { %v487_v33 = vpack.c.bf16 %v484_v32, %v484_v32  ;;  %516 = vst.msk [vmem:[%s351_s22] sm:$0xff] %vm408_vm2, %v484_v32 }
 0x1b2   : > { %v454_v34 = vpop.f32.mrf.mxu2  ;;  %v481_v35 = vpop.f32.mrf.mxu3 }
 0x1b3   : > { %689 = vmatmul.msk.bf16.vlgmr.msrb.gmra.mxu1 %vm408_vm2, %v487_v33 }
 0x1b4   : > { %v563_v40 = vld [vmem:[%s339_s19] sm:$0xff] (%p828_p4) }
 0x1b5   : > { %564 = vst [vmem:[%s532_s27] sm:$0xff] (%p828_p4), %v563_v40 }
 0x230   : > { %v510_v37 = vpop.f32.mrf.mxu1 }
 0x231   : > { %v511_v38 = vadd.f32 %v728_v36, %v510_v37 }
 0x233   : > { %690 = vst.msk [vmem:[%s339_s19 + $0x8] sm:$0xff] %vm456_vm3, %v511_v38 }
 0x234   : > { %530 = sbr.rel (!%p828_p4) target bundleno = 572 (0x23c), region = 60 }
 0x238   : > { %v512_v39 = vpop.f32.mrf.mxu1 }
 0x23a   : > { %v565_v41 = vld [vmem:[%s339_s19 + $0x8] sm:$0xff] }
 0x23b   : > { %566 = vst [vmem:[%s532_s27 + $0x10] sm:$0xff] %v565_v41 }
 0x23c PF: > { %p17_p8 = scmp.ge.s32.totalorder %s818_s13, 4   ;;  %s916_s30 = smov %s747_s10 }
 0x23d   : > { %s917_s10 = smov %s826_s16  ;;  %s918_s11 = smov %s818_s13 }
 0x23e   :  { %19 = sbr.rel (!%p17_p8) target bundleno = 2 (0x2), region = 136 }

</bundles_post_ra>
